<compile_context>
chip_gen: v5e
topology: v5e:2x2
jax: 0.10.0
libtpu: 0.0.40
codegen_flags: <defaults>
</compile_context>

<pallas_src>
import jax
import jax.numpy as jnp
from jax import lax
from jax.experimental import pallas as pl
from jax.experimental.pallas import tpu as pltpu

LANE = 128


def _round_up(n, m):
    return ((n + m - 1) // m) * m


def mlp_kernel(x_ref, w1_ref, b1_ref, wo_ref, bo_ref, out_ref):
    # x_ref: (TB, in_dim) f32    w1_ref: (in_dim, hid) bf16   b1_ref: (1, hid) f32
    # wo_ref: (hid, out_p) bf16  bo_ref: (1, out_p) f32       out_ref: (TB, out_p) f32

    # h = tanh(x @ W1 + b1) -- cast x to bf16 in-kernel (cast hides under the
    # MXU), bf16 MXU matmul with f32 accumulation, f32 tanh (v5e has no bf16 EUP).
    x_bf = x_ref[...].astype(jnp.bfloat16)
    h = jnp.tanh(
        jnp.dot(x_bf, w1_ref[...], preferred_element_type=jnp.float32)
        + b1_ref[...]
    )                                                           # (TB, hid) f32

    # safe_poincare_layer except-path: norm-clip h (u branch is dead code).
    # Fused: scale = min(0.95 / ||h||, 1.0) via a single EUP rsqrt on (TB, 1).
    ssq = jnp.sum(h * h, axis=1, keepdims=True)                 # (TB, 1)
    scale = jnp.minimum(
        jnp.float32(0.95) * lax.rsqrt(ssq + jnp.float32(1e-12)),
        jnp.float32(1.0),
    )                                                           # (TB, 1)
    z = (h * scale).astype(jnp.bfloat16)                        # (TB, hid) bf16

    # output = z @ Wout + bout   (Wout zero-padded to a lane-dense 128 slab).
    out_ref[...] = (
        jnp.dot(z, wo_ref[...], preferred_element_type=jnp.float32) + bo_ref[...]
    )


def prepare_params(w1, b1, wo, bo):
    """One-time weight prep (hoist out of the per-call path when weights are
    static across calls): bf16 weights for the MXU, lane-dense zero-padded
    output projection, 2-D f32 biases."""
    in_dim, hid = w1.shape
    out_dim = wo.shape[1]
    out_p = _round_up(out_dim, LANE)

    w1_bf = w1.astype(jnp.bfloat16)                                     # (in_dim, hid)
    wo_pad = jnp.zeros((hid, out_p), jnp.float32).at[:, :out_dim].set(wo)
    wo_bf = wo_pad.astype(jnp.bfloat16)                                 # (hid, out_p)
    b1_2d = b1.reshape(1, hid).astype(jnp.float32)                      # (1, hid)
    bo_pad = jnp.zeros((1, out_p), jnp.float32).at[0, :out_dim].set(
        bo.reshape(-1).astype(jnp.float32)
    )                                                                   # (1, out_p)
    return (w1_bf, b1_2d, wo_bf, bo_pad, out_dim)


def numerically_stable_mlp_prepared(x, params, *, block_b=256):
    """Forward pass using pre-prepared params (preferred call path)."""
    w1_bf, b1_2d, wo_bf, bo_pad, out_dim = params
    B, in_dim = x.shape
    hid = w1_bf.shape[1]
    out_p = wo_bf.shape[1]

    # Tile selection: minimize padded rows, keep tiles balanced, tb % 16 == 0
    # (bf16 sublane packing is (16, 128)).  B=384, block_b=256 -> 2 tiles of 192.
    n_tiles = pl.cdiv(B, block_b)
    tb = _round_up(pl.cdiv(B, n_tiles), 16)
    b_padded = tb * n_tiles

    x_in = x.astype(jnp.float32)          # no-op for f32 inputs; no bf16 pre-pass
    if b_padded != B:
        # Only the (rare) remainder rows are padded; with the tile selection
        # above this is at most 15 rows, not a whole tile.
        x_in = jnp.pad(x_in, ((0, b_padded - B), (0, 0)))

    out = pl.pallas_call(
        mlp_kernel,
        out_shape=jax.ShapeDtypeStruct((b_padded, out_p), jnp.float32),
        grid=(n_tiles,),
        in_specs=[
            pl.BlockSpec((tb, in_dim), lambda i: (i, 0)),    # x: batch-tiled, f32
            pl.BlockSpec((in_dim, hid), lambda i: (0, 0)),   # W1: VMEM-resident bf16
            pl.BlockSpec((1, hid), lambda i: (0, 0)),        # b1
            pl.BlockSpec((hid, out_p), lambda i: (0, 0)),    # Wout (padded) bf16
            pl.BlockSpec((1, out_p), lambda i: (0, 0)),      # bout (padded)
        ],
        out_specs=pl.BlockSpec((tb, out_p), lambda i: (i, 0)),
        compiler_params=pltpu.CompilerParams(
            # Independent batch tiles -> allow the two v7x TensorCores to split
            # the grid (harmless no-op on single-TC v5e/v6e).
            dimension_semantics=("parallel",),
        ),
    )(x_in, w1_bf, b1_2d, wo_bf, bo_pad)

    return out[:B, :out_dim]


def numerically_stable_mlp(x, w1, b1, w2, b2, wo, bo, *, block_b=256):
    """Convenience path matching the module's parameter list.  w2 / b2 are
    accepted for parity but unused: the reference's except path discards u,
    so the sigmoid branch never contributes to the output."""
    del w2, b2
    params = prepare_params(w1, b1, wo, bo)
    return numerically_stable_mlp_prepared(x, params, block_b=block_b)


def reference_bf16(x, w1, b1, wo, bo):
    """Pure-JAX reference matching the kernel's math (bf16 MXU operands, f32
    accumulation) for a tight correctness check."""
    h = jnp.tanh(
        jnp.dot(x.astype(jnp.bfloat16), w1.astype(jnp.bfloat16),
                preferred_element_type=jnp.float32) + b1
    )
    h_norm = jnp.sqrt(jnp.sum(h * h, axis=1, keepdims=True))
    z = h * jnp.minimum(h_norm, 0.95) / (h_norm + 1e-8)
    return jnp.dot(z.astype(jnp.bfloat16), wo.astype(jnp.bfloat16),
                   preferred_element_type=jnp.float32) + bo


def reference_f32(x, w1, b1, w2, b2, wo, bo):
    """Full-f32 reference of the original module math (u computed and, as in
    the module's always-taken except path, discarded)."""
    h = jnp.tanh(x @ w1 + b1)
    _u = jax.nn.sigmoid(h @ w2 + b2)  # dead in the module's except path
    h_norm = jnp.linalg.norm(h, axis=1, keepdims=True)
    z = h * jnp.minimum(h_norm, 0.95) / (h_norm + 1e-8)
    return z @ wo + bo


if __name__ == "__main__":
    # Module-default feature sizes; B=384 exercises the balanced-tile path
    # (2 tiles of 192, zero padded rows).
    B, in_dim, hid, out_dim = 384, 784, 128, 10

    key = jax.random.PRNGKey(0)
    kx, k1, k2, k3 = jax.random.split(key, 4)

    x = jax.random.normal(kx, (B, in_dim), dtype=jnp.float32)
    w1 = jax.random.normal(k1, (in_dim, hid), dtype=jnp.float32) * 0.01
    b1 = jnp.zeros((hid,), dtype=jnp.float32)
    w2 = jax.random.normal(k2, (hid, hid), dtype=jnp.float32) * 0.01
    b2 = jnp.zeros((hid,), dtype=jnp.float32)
    wo = jax.random.normal(k3, (hid, out_dim), dtype=jnp.float32) * 0.01
    bo = jnp.zeros((out_dim,), dtype=jnp.float32)

    # Hoisted one-time weight prep, reused across calls.
    params = prepare_params(w1, b1, wo, bo)

    out = numerically_stable_mlp_prepared(x, params)
    out = jax.block_until_ready(out)
    assert out.shape == (B, out_dim)

    # Tight check against a reference that matches the kernel's bf16-MXU math.
    ref_m = reference_bf16(x, w1, b1.reshape(1, hid), wo, bo.reshape(1, out_dim))
    assert jnp.allclose(out, ref_m, atol=1e-3, rtol=1e-2), \
        "mismatch vs bf16-matched reference"

    # Loose check against the original full-f32 module math (bounds the
    # bf16-weight quantization error).
    ref_f = reference_f32(x, w1, b1, w2, b2, wo, bo)
    assert jnp.allclose(out, ref_f, atol=5e-3, rtol=5e-2), \
        "mismatch vs f32 reference"

    # Small production-like batch: exercises the min-16 tile clamp and the
    # minimal remainder-padding path (B=8 -> single 16-row tile).
    x_small = x[:8]
    out_small = jax.block_until_ready(
        numerically_stable_mlp_prepared(x_small, params))
    assert out_small.shape == (8, out_dim)
    assert jnp.allclose(out_small, ref_m[:8], atol=1e-3, rtol=1e-2), \
        "small-batch mismatch vs bf16-matched reference"

    # Full-parameter-list convenience path (w2/b2 accepted, unused).
    out_full = jax.block_until_ready(
        numerically_stable_mlp(x, w1, b1, w2, b2, wo, bo))
    assert jnp.allclose(out_full, out, atol=0, rtol=0)

    print("KERNEL_OK")
</pallas_src>

<mosaic_0001>
module attributes {stable_mosaic.version = 11 : i64} {
  func.func @mlp_kernel(%arg0: i32, %arg1: memref<192x784xf32, #tpu.memory_space<vmem>>, %arg2: memref<784x128xbf16, #tpu.memory_space<vmem>>, %arg3: memref<1x128xf32, #tpu.memory_space<vmem>>, %arg4: memref<128x128xbf16, #tpu.memory_space<vmem>>, %arg5: memref<1x128xf32, #tpu.memory_space<vmem>>, %arg6: memref<192x128xf32, #tpu.memory_space<vmem>>) attributes {dimension_semantics = [#tpu.dimension_semantics<parallel>], iteration_bounds = array<i64: 2>, scalar_prefetch = 0 : i64, scratch_operands = 0 : i64, tpu.core_type = #tpu.core_type<tc>, window_params = [{transform_indices = @transform_0, window_bounds = array<i64: 192, 784>}, {pipeline_mode = #tpu.pipeline_mode<synchronous>, transform_indices = @transform_1, window_bounds = array<i64: 784, 128>}, {pipeline_mode = #tpu.pipeline_mode<synchronous>, transform_indices = @transform_2, window_bounds = array<i64: 1, 128>}, {pipeline_mode = #tpu.pipeline_mode<synchronous>, transform_indices = @transform_3, window_bounds = array<i64: 128, 128>}, {pipeline_mode = #tpu.pipeline_mode<synchronous>, transform_indices = @transform_4, window_bounds = array<i64: 1, 128>}, {transform_indices = @transform_5, window_bounds = array<i64: 192, 128>}]} {
    %c0 = arith.constant 0 : index
    %c0_0 = arith.constant 0 : index
    %0 = vector.load %arg1[%c0, %c0_0] : memref<192x784xf32, #tpu.memory_space<vmem>>, vector<192x784xf32>
    %1 = arith.truncf %0 : vector<192x784xf32> to vector<192x784xbf16>
    %c0_1 = arith.constant 0 : index
    %c0_2 = arith.constant 0 : index
    %2 = vector.load %arg2[%c0_1, %c0_2] : memref<784x128xbf16, #tpu.memory_space<vmem>>, vector<784x128xbf16>
    %cst = arith.constant dense<0.000000e+00> : vector<192x128xf32>
    %3 = tpu.matmul %1, %2, %cst {dimension_numbers = #tpu.dot_dimension_numbers<[1], [0], [0], [1], [0, 0, 1, 1], [], []>} : vector<192x784xbf16>, vector<784x128xbf16>, vector<192x128xf32> -> vector<192x128xf32>
    %c0_3 = arith.constant 0 : index
    %c0_4 = arith.constant 0 : index
    %4 = vector.load %arg3[%c0_3, %c0_4] : memref<1x128xf32, #tpu.memory_space<vmem>>, vector<1x128xf32>
    %5 = vector.broadcast %4 : vector<1x128xf32> to vector<192x128xf32>
    %6 = arith.addf %3, %5 : vector<192x128xf32>
    %7 = math.tanh %6 : vector<192x128xf32>
    %8 = arith.mulf %7, %7 : vector<192x128xf32>
    %cst_5 = arith.constant dense<0.000000e+00> : vector<192xf32>
    %9 = vector.multi_reduction <add>, %8, %cst_5 [1] : vector<192x128xf32> to vector<192xf32>
    %10 = vector.shape_cast %9 : vector<192xf32> to vector<192x1xf32>
    %cst_6 = arith.constant 9.99999996E-13 : f32
    %11 = vector.broadcast %cst_6 : f32 to vector<192x1xf32>
    %12 = arith.addf %10, %11 : vector<192x1xf32>
    %13 = math.rsqrt %12 : vector<192x1xf32>
    %cst_7 = arith.constant 0.949999988 : f32
    %14 = vector.broadcast %cst_7 : f32 to vector<192x1xf32>
    %15 = arith.mulf %14, %13 : vector<192x1xf32>
    %cst_8 = arith.constant 1.000000e+00 : f32
    %16 = vector.broadcast %cst_8 : f32 to vector<192x1xf32>
    %17 = arith.minimumf %15, %16 : vector<192x1xf32>
    %18 = vector.broadcast %17 : vector<192x1xf32> to vector<192x128xf32>
    %19 = arith.mulf %7, %18 : vector<192x128xf32>
    %20 = arith.truncf %19 : vector<192x128xf32> to vector<192x128xbf16>
    %c0_9 = arith.constant 0 : index
    %c0_10 = arith.constant 0 : index
    %21 = vector.load %arg4[%c0_9, %c0_10] : memref<128x128xbf16, #tpu.memory_space<vmem>>, vector<128x128xbf16>
    %cst_11 = arith.constant dense<0.000000e+00> : vector<192x128xf32>
    %22 = tpu.matmul %20, %21, %cst_11 {dimension_numbers = #tpu.dot_dimension_numbers<[1], [0], [0], [1], [0, 0, 1, 1], [], []>} : vector<192x128xbf16>, vector<128x128xbf16>, vector<192x128xf32> -> vector<192x128xf32>
    %c0_12 = arith.constant 0 : index
    %c0_13 = arith.constant 0 : index
    %23 = vector.load %arg5[%c0_12, %c0_13] : memref<1x128xf32, #tpu.memory_space<vmem>>, vector<1x128xf32>
    %24 = vector.broadcast %23 : vector<1x128xf32> to vector<192x128xf32>
    %25 = arith.addf %22, %24 : vector<192x128xf32>
    %c0_14 = arith.constant 0 : index
    %c0_15 = arith.constant 0 : index
    %26 = vector.load %arg6[%c0_14, %c0_15] : memref<192x128xf32, #tpu.memory_space<vmem>>, vector<192x128xf32>
    tpu.vector_store %arg6[%c0_14, %c0_15], %25 {strides = array<i32>} : memref<192x128xf32, #tpu.memory_space<vmem>>, vector<192x128xf32>,
    return
  }
  func.func @transform_0(%arg0: i32) -> (i32, i32) {
    %c0_i32 = arith.constant 0 : i32
    %c0_i32_0 = arith.constant 0 : i32
    return %arg0, %c0_i32 : i32, i32
  }
  func.func @transform_1(%arg0: i32) -> (i32, i32) {
    %c0_i32 = arith.constant 0 : i32
    %c0_i32_0 = arith.constant 0 : i32
    %c0_i32_1 = arith.constant 0 : i32
    return %c0_i32, %c0_i32_0 : i32, i32
  }
  func.func @transform_2(%arg0: i32) -> (i32, i32) {
    %c0_i32 = arith.constant 0 : i32
    %c0_i32_0 = arith.constant 0 : i32
    %c0_i32_1 = arith.constant 0 : i32
    return %c0_i32, %c0_i32_0 : i32, i32
  }
  func.func @transform_3(%arg0: i32) -> (i32, i32) {
    %c0_i32 = arith.constant 0 : i32
    %c0_i32_0 = arith.constant 0 : i32
    %c0_i32_1 = arith.constant 0 : i32
    return %c0_i32, %c0_i32_0 : i32, i32
  }
  func.func @transform_4(%arg0: i32) -> (i32, i32) {
    %c0_i32 = arith.constant 0 : i32
    %c0_i32_0 = arith.constant 0 : i32
    %c0_i32_1 = arith.constant 0 : i32
    return %c0_i32, %c0_i32_0 : i32, i32
  }
  func.func @transform_5(%arg0: i32) -> (i32, i32) {
    %c0_i32 = arith.constant 0 : i32
    %c0_i32_0 = arith.constant 0 : i32
    return %arg0, %c0_i32 : i32, i32
  }
}

</mosaic_0001>

<bundles_post_ra>
// kernel: tpu_custom_call.1
= control target key start
LH: loop header
LB: loop body
LE: loop exit
PB: predicated region body
PF: predicated region fallthrough
CT: control target
= control target key end

     0   :  { %10 = vsyncpa [#allocation3], 0  ;;  %s3393_s0 = inlined_call_operand.vmem [shape: f32[384,784], index: 0, kind: input, shape index: {}]   ;;  %s3394_s1 = inlined_call_operand.vmem [shape: bf16[784,128], index: 1, kind: input, shape index: {}]   ;;  %s3395_s2 = inlined_call_operand.vmem [shape: f32[1,128], index: 2, kind: input, shape index: {}]   ;;  %s3396_s3 = inlined_call_operand.vmem [shape: bf16[128,128], index: 3, kind: input, shape index: {}]   ;;  %s3397_s4 = inlined_call_operand.vmem [shape: f32[1,128], index: 4, kind: input, shape index: {}]   ;;  %s3398_s5 = inlined_call_operand.hbm [shape: f32[384,128], index: 5, kind: output, shape index: {}]  }
   0x1   :  { %12 = vsyncpa [#allocation3 + $0x1], 0  ;;  %s2624_s18 = smov 0   ;;  %s2626_s19 = smov 0  }
   0x2   :  { %s2628_s20 = smov 0   ;;  %s2630_s21 = smov 0  }
   0x3 LB: > { %s2645_s22 = sadd.s32 4294967295, %s2590_s21   ;;  %s2081_s23 = sadd.s32 4294967294, %s2590_s21   ;;  %s2590_s21 = sphi %s2630_s21, %s3404_s21   ;;  %s2586_s20 = sphi %s2628_s20, %s3403_s20   ;;  %s2582_s19 = sphi %s2626_s19, %s3402_s19   ;;  %s2578_s18 = sphi %s2624_s18, %s3401_s18  }
   0x4   : > { %s2649_s24 = sadd.s32 1, %s2590_s21   ;;  %s135_s25 = sadd.s32 1, %s2586_s20 }
   0x5   : > { %s132_s26 = ssub.s32 %s2590_s21, %s2649_s24  ;;  %p145_p0 = scmp.ne.s32.totalorder %s2586_s20, %s2582_s19 }
   0x6   : > { %p133_p1 = scmp.eq.s32.totalorder %s132_s26, 0  ;;  %p146_p2 = scmp.eq.s32.totalorder %s2645_s22, 1 }
   0x7   : > { %p151_p3 = scmp.ne.s32.totalorder %s2582_s19, %s2578_s18  ;;  %p152_p4 = scmp.eq.s32.totalorder %s2081_s23, 1 }
   0x8   : > { %s2660_s27 = scalar_select %p133_p1, %s2586_s20, %s135_s25  }
   0x9   : > { %p2662_p5 = por %p146_p2, %p145_p0  ;;  %p2666_p6 = por %p152_p4, %p151_p3 }
   0xa   : > { %p2084_p7 = scmp.ge.s32.totalorder %s2590_s21, 1  ;;  %p192_p8 = scmp.lt.s32.totalorder %s2590_s21, 3 }
   0xc   : > { %p193_p9 = pnand %p2084_p7, %p192_p8 }
   0xd   : > { %s221_s9 = smul.u32 (!%p193_p9), 24, %s2645_s22  ;;  %s218_s23 = sand.u32 (!%p193_p9), 1, %s2582_s19  }
   0xe   : > { %196 = sbr.rel (%p193_p9) target bundleno = 862 (0x35e), region = 40  ;;  %s2548_s17 = scalar_lea.hbm (!%p193_p9), %s3398_s5, 384 }
   0xf   : > { %p222_p10 = scmp.lt.s32.totalorder (!%p193_p9), %s221_s9, 47  ;;  %s2387_s26 = smul.u32 (!%p193_p9), 192, %s218_s23 }
  0x10   : > { %s2386_s7 = smul.u32 (!%p193_p9), 192, %s2645_s22 }
  0x11   : > { %s3304_s6 = scalar_lea.vmem (!%p193_p9), [#allocation2], %s2387_s26 }
  0x12   : > { %s2015_s11 = scalar_lea.hbm (!%p193_p9), %s3398_s5, %s2386_s7  ;;  %s2016_s12 = sshll.u32 (!%p193_p9), %s3304_s6, 4  ;;  %s2017_s12 = int_to_ptr.vmem [resolvable:$true] %s2016_s12 }
  0x13   : > { %v2336_v0 = vld [vmem:[%s3394_s1 + $0x38] sm:$0xff]  ;;  %v2335_v4 = vld [vmem:[%s3394_s1 + $0x30] sm:$0xff]  ;;  %v2334_v8 = vld [vmem:[%s3394_s1 + $0x28] sm:$0xff]  ;;  %s3406_s9 = smov (!%p222_p10, %s221_s9), 47  ;;  %vm878_vm0 = vcmask 130048  }
  0x14   : > { %v2344_v1 = vld [vmem:[%s3394_s1 + $0x78] sm:$0xff]  ;;  %915 = vmatpush.bf16.msra.mxu0 %v2336_v0  ;;  %v2343_v5 = vld [vmem:[%s3394_s1 + $0x70] sm:$0xff]  ;;  %v2342_v9 = vld [vmem:[%s3394_s1 + $0x68] sm:$0xff]  ;;  %s2388_s25 = smul.u32 56, %s3406_s9  ;;  %s2004_s9 = scalar_lea.sflag [#allocation3], %s218_s23 }
  0x15   : > { %v2352_v2 = vld [vmem:[%s3394_s1 + $0xb8] sm:$0xff]  ;;  %984 = vmatpush.bf16.msra.mxu1 %v2344_v1  ;;  %v2351_v6 = vld [vmem:[%s3394_s1 + $0xb0] sm:$0xff]  ;;  %v2350_v10 = vld [vmem:[%s3394_s1 + $0xa8] sm:$0xff] }
  0x16   : > { %v2360_v3 = vld [vmem:[%s3394_s1 + $0xf8] sm:$0xff]  ;;  %1053 = vmatpush.bf16.msra.mxu2 %v2352_v2  ;;  %v2359_v7 = vld [vmem:[%s3394_s1 + $0xf0] sm:$0xff]  ;;  %v2358_v11 = vld [vmem:[%s3394_s1 + $0xe8] sm:$0xff]  ;;  %s2754_s14 = scalar_lea.vmem %s3393_s0, %s2388_s25 }
  0x17   : > { %1122 = vmatpush.bf16.msra.mxu3 %v2360_v3  ;;  %v2333_v12 = vld [vmem:[%s3394_s1 + $0x20] sm:$0xff]  ;;  %v2332_v16 = vld [vmem:[%s3394_s1 + $0x18] sm:$0xff]  ;;  %v2331_v20 = vld [vmem:[%s3394_s1 + $0x10] sm:$0xff] }
  0x18   : > { %916 = vmatpush.bf16.msra.mxu0 %v2335_v4  ;;  %v2341_v13 = vld [vmem:[%s3394_s1 + $0x60] sm:$0xff]  ;;  %v2340_v17 = vld [vmem:[%s3394_s1 + $0x58] sm:$0xff]  ;;  %v2339_v21 = vld [vmem:[%s3394_s1 + $0x50] sm:$0xff] }
  0x19   : > { %985 = vmatpush.bf16.msra.mxu1 %v2343_v5  ;;  %v2349_v14 = vld [vmem:[%s3394_s1 + $0xa0] sm:$0xff]  ;;  %v2348_v18 = vld [vmem:[%s3394_s1 + $0x98] sm:$0xff]  ;;  %v2347_v22 = vld [vmem:[%s3394_s1 + $0x90] sm:$0xff] }
  0x1a   : > { %1054 = vmatpush.bf16.msra.mxu2 %v2351_v6  ;;  %v2357_v15 = vld [vmem:[%s3394_s1 + $0xe0] sm:$0xff]  ;;  %v2356_v19 = vld [vmem:[%s3394_s1 + $0xd8] sm:$0xff]  ;;  %v2355_v23 = vld [vmem:[%s3394_s1 + $0xd0] sm:$0xff] }
  0x1b   : > { %1123 = vmatpush.bf16.msra.mxu3 %v2359_v7  ;;  %v2330_v24 = vld [vmem:[%s3394_s1 + $0x8] sm:$0xff]  ;;  %v2329_v28 = vld [vmem:[%s3394_s1] sm:$0xff]  ;;  %v237_v33 = vld [vmem:[%s2754_s14 + $0x38] sm:$0xff] }
  0x1c   : > { %917 = vmatpush.bf16.msra.mxu0 %v2334_v8  ;;  %v2338_v25 = vld [vmem:[%s3394_s1 + $0x48] sm:$0xff]  ;;  %v2337_v29 = vld [vmem:[%s3394_s1 + $0x40] sm:$0xff]  ;;  %v232_v36 = vld [vmem:[%s2754_s14 + $0x10] sm:$0xff] }
  0x1d   : > { %986 = vmatpush.bf16.msra.mxu1 %v2342_v9  ;;  %v2346_v26 = vld [vmem:[%s3394_s1 + $0x88] sm:$0xff]  ;;  %v2345_v30 = vld [vmem:[%s3394_s1 + $0x80] sm:$0xff]  ;;  %v233_v38 = vld [vmem:[%s2754_s14 + $0x18] sm:$0xff] }
  0x1e   : > { %1055 = vmatpush.bf16.msra.mxu2 %v2350_v10  ;;  %v2354_v27 = vld [vmem:[%s3394_s1 + $0xc8] sm:$0xff]  ;;  %v2353_v31 = vld [vmem:[%s3394_s1 + $0xc0] sm:$0xff]  ;;  %v240_v39 = vld [vmem:[%s2754_s14 + $0x50] sm:$0xff] }
  0x1f   : > { %1124 = vmatpush.bf16.msra.mxu3 %v2358_v11  ;;  %v230_v32 = vld [vmem:[%s2754_s14] sm:$0xff]  ;;  %v231_v34 = vld [vmem:[%s2754_s14 + $0x8] sm:$0xff]  ;;  %v2368_v41 = vld [vmem:[%s3394_s1 + $0x138] sm:$0xff]  ;;  %v401_v45 = vpack.c.bf16 %v240_v39, %v233_v38 }
  0x20   : > { %918 = vmatpush.bf16.msra.mxu0 %v2333_v12  ;;  %v238_v35 = vld [vmem:[%s2754_s14 + $0x40] sm:$0xff]  ;;  %v239_v37 = vld [vmem:[%s2754_s14 + $0x48] sm:$0xff]  ;;  %v398_v42 = vpack.c.bf16 %v237_v33, %v230_v32  ;;  %v2376_v46 = vld [vmem:[%s3394_s1 + $0x178] sm:$0xff] }
  0x21   : > { %987 = vmatpush.bf16.msra.mxu1 %v2341_v13  ;;  %v2377_v40 = vld [vmem:[%s3394_s1 + $0x180] sm:$0xff]  ;;  %v399_v43 = vpack.c.bf16 %v238_v35, %v231_v34  ;;  %v400_v44 = vpack.c.bf16 %v239_v37, %v232_v36  ;;  %v2367_v47 = vld [vmem:[%s3394_s1 + $0x130] sm:$0xff]  ;;  %v251_v50 = vld [vmem:[%s2754_s14 + $0xa8] sm:$0xff] }
  0x22   : > { %1056 = vmatpush.bf16.msra.mxu2 %v2349_v14  ;;  %v2375_v48 = vld [vmem:[%s3394_s1 + $0x170] sm:$0xff]  ;;  %v245_v51 = vld [vmem:[%s2754_s14 + $0x78] sm:$0xff]  ;;  %v246_v53 = vld [vmem:[%s2754_s14 + $0x80] sm:$0xff] }
  0x23   : > { %1125 = vmatpush.bf16.msra.mxu3 %v2357_v15  ;;  %v244_v49 = vld [vmem:[%s2754_s14 + $0x70] sm:$0xff]  ;;  %v253_v54 = vld [vmem:[%s2754_s14 + $0xb8] sm:$0xff]  ;;  %v247_v55 = vld [vmem:[%s2754_s14 + $0x88] sm:$0xff] }
  0x24   : > { %919 = vmatpush.bf16.msra.mxu0 %v2332_v16  ;;  %v252_v52 = vld [vmem:[%s2754_s14 + $0xb0] sm:$0xff]  ;;  %v254_v56 = vld [vmem:[%s2754_s14 + $0xc0] sm:$0xff]  ;;  %v405_v57 = vpack.c.bf16 %v251_v50, %v244_v49  ;;  %v407_v59 = vpack.c.bf16 %v253_v54, %v246_v53  ;;  %v2366_v61 = vld [vmem:[%s3394_s1 + $0x128] sm:$0xff] }
  0x25   : > { %988 = vmatpush.bf16.msra.mxu1 %v2340_v17  ;;  %v406_v58 = vpack.c.bf16 %v252_v52, %v245_v51  ;;  %v408_v60 = vpack.c.bf16 %v254_v56, %v247_v55  ;;  %v2374_v62 = vld [vmem:[%s3394_s1 + $0x168] sm:$0xff]  ;;  %v258_v63 = vld [vmem:[%s2754_s14 + $0xe0] sm:$0xff]  ;;  %v265_v0 = vld [vmem:[%s2754_s14 + $0x118] sm:$0xff] }
  0x26   : > { %1057 = vmatpush.bf16.msra.mxu2 %v2348_v18  ;;  %v259_v1 = vld [vmem:[%s2754_s14 + $0xe8] sm:$0xff]  ;;  %v266_v2 = vld [vmem:[%s2754_s14 + $0x120] sm:$0xff]  ;;  %v260_v3 = vld [vmem:[%s2754_s14 + $0xf0] sm:$0xff]  ;;  %v412_v7 = vpack.c.bf16 %v265_v0, %v258_v63 }
  0x27   : > { %1126 = vmatpush.bf16.msra.mxu3 %v2356_v19  ;;  %v267_v4 = vld [vmem:[%s2754_s14 + $0x128] sm:$0xff]  ;;  %v261_v5 = vld [vmem:[%s2754_s14 + $0xf8] sm:$0xff]  ;;  %v268_v6 = vld [vmem:[%s2754_s14 + $0x130] sm:$0xff]  ;;  %v413_v8 = vpack.c.bf16 %v266_v2, %v259_v1 }
  0x28   : > { %920 = vmatpush.bf16.msra.mxu0 %v2331_v20  ;;  %v414_v9 = vpack.c.bf16 %v267_v4, %v260_v3  ;;  %v415_v10 = vpack.c.bf16 %v268_v6, %v261_v5  ;;  %v2365_v11 = vld [vmem:[%s3394_s1 + $0x120] sm:$0xff]  ;;  %v272_v13 = vld [vmem:[%s2754_s14 + $0x150] sm:$0xff]  ;;  %v279_v14 = vld [vmem:[%s2754_s14 + $0x188] sm:$0xff] }
  0x29   : > { %989 = vmatpush.bf16.msra.mxu1 %v2339_v21  ;;  %v2373_v12 = vld [vmem:[%s3394_s1 + $0x160] sm:$0xff]  ;;  %v273_v15 = vld [vmem:[%s2754_s14 + $0x158] sm:$0xff]  ;;  %v280_v16 = vld [vmem:[%s2754_s14 + $0x190] sm:$0xff]  ;;  %v419_v21 = vpack.c.bf16 %v279_v14, %v272_v13 }
  0x2a   : > { %1058 = vmatpush.bf16.msra.mxu2 %v2347_v22  ;;  %v274_v17 = vld [vmem:[%s2754_s14 + $0x160] sm:$0xff]  ;;  %v281_v18 = vld [vmem:[%s2754_s14 + $0x198] sm:$0xff]  ;;  %v275_v19 = vld [vmem:[%s2754_s14 + $0x168] sm:$0xff]  ;;  %v420_v22 = vpack.c.bf16 %v280_v16, %v273_v15 }
  0x2b   : > { %1127 = vmatpush.bf16.msra.mxu3 %v2355_v23  ;;  %v282_v20 = vld [vmem:[%s2754_s14 + $0x1a0] sm:$0xff]  ;;  %v421_v23 = vpack.c.bf16 %v281_v18, %v274_v17  ;;  %v296_v32 = vld [vmem:[%s2754_s14 + $0x210] sm:$0xff]  ;;  %v2364_v37 = vld [vmem:[%s3394_s1 + $0x118] sm:$0xff] }
  0x2c   : > { %921 = vmatpush.bf16.msra.mxu0 %v2330_v24  ;;  %v422_v24 = vpack.c.bf16 %v282_v20, %v275_v19  ;;  %v2372_v38 = vld [vmem:[%s3394_s1 + $0x158] sm:$0xff]  ;;  %v300_v39 = vld [vmem:[%s2754_s14 + $0x230] sm:$0xff]  ;;  %v314_v53 = vld [vmem:[%s2754_s14 + $0x2a0] sm:$0xff] }
  0x2d   : > { %990 = vmatpush.bf16.msra.mxu1 %v2338_v25  ;;  %v286_v25 = vld [vmem:[%s2754_s14 + $0x1c0] sm:$0xff]  ;;  %v2363_v51 = vld [vmem:[%s3394_s1 + $0x110] sm:$0xff]  ;;  %v321_v54 = vld [vmem:[%s2754_s14 + $0x2d8] sm:$0xff] }
  0x2e   : > { %1059 = vmatpush.bf16.msra.mxu2 %v2346_v26  ;;  %v293_v26 = vld [vmem:[%s2754_s14 + $0x1f8] sm:$0xff]  ;;  %v2371_v52 = vld [vmem:[%s3394_s1 + $0x150] sm:$0xff]  ;;  %v315_v55 = vld [vmem:[%s2754_s14 + $0x2a8] sm:$0xff] }
  0x2f   : > { %1128 = vmatpush.bf16.msra.mxu3 %v2354_v27  ;;  %v287_v27 = vld [vmem:[%s2754_s14 + $0x1c8] sm:$0xff]  ;;  %v426_v33 = vpack.c.bf16 %v293_v26, %v286_v25  ;;  %v322_v56 = vld [vmem:[%s2754_s14 + $0x2e0] sm:$0xff]  ;;  %v328_v1 = vld [vmem:[%s2754_s14 + $0x310] sm:$0xff] }
  0x30   : > { %922 = vmatpush.bf16.msra.mxu0 %v2329_v28  ;;  %v294_v28 = vld [vmem:[%s2754_s14 + $0x200] sm:$0xff]  ;;  %v335_v2 = vld [vmem:[%s2754_s14 + $0x348] sm:$0xff]  ;;  %v329_v3 = vld [vmem:[%s2754_s14 + $0x318] sm:$0xff] }
  0x31   : > { %991 = vmatpush.bf16.msra.mxu1 %v2337_v29  ;;  %v288_v29 = vld [vmem:[%s2754_s14 + $0x1d0] sm:$0xff]  ;;  %v427_v34 = vpack.c.bf16 %v294_v28, %v287_v27  ;;  %v330_v5 = vld [vmem:[%s2754_s14 + $0x320] sm:$0xff]  ;;  %v337_v6 = vld [vmem:[%s2754_s14 + $0x358] sm:$0xff] }
  0x32   : > { %1060 = vmatpush.bf16.msra.mxu2 %v2345_v30  ;;  %v295_v30 = vld [vmem:[%s2754_s14 + $0x208] sm:$0xff]  ;;  %v336_v4 = vld [vmem:[%s2754_s14 + $0x350] sm:$0xff]  ;;  %v2886_v15 = vld [vmem:[%s3395_s2] ss:$0 sm:$0xff] }
  0x33   : > { %1129 = vmatpush.bf16.msra.mxu3 %v2353_v31  ;;  %923 = vmatmul.bf16.vlgmr.msra.gmra.mxu0 %v398_v42  ;;  %v289_v31 = vld [vmem:[%s2754_s14 + $0x1d8] sm:$0xff]  ;;  %v428_v35 = vpack.c.bf16 %v295_v30, %v288_v29  ;;  %v308_v42 = vld [vmem:[%s2754_s14 + $0x270] sm:$0xff]  ;;  %v2362_v13 = vld [vmem:[%s3394_s1 + $0x108] sm:$0xff] }
  0x34   : > { %1191 = vmatpush.bf16.msrb.mxu0 %v2368_v41  ;;  %992 = vmatmul.bf16.vlgmr.msra.gmra.mxu1 %v399_v43  ;;  %v429_v36 = vpack.c.bf16 %v296_v32, %v289_v31  ;;  %v301_v41 = vld [vmem:[%s2754_s14 + $0x238] sm:$0xff]  ;;  %v302_v43 = vld [vmem:[%s2754_s14 + $0x240] sm:$0xff]  ;;  %v2370_v14 = vld [vmem:[%s3394_s1 + $0x148] sm:$0xff] }
  0x35   : > { %1061 = vmatmul.bf16.vlgmr.msra.gmra.mxu2 %v400_v44  ;;  %1260 = vmatpush.bf16.msrb.mxu1 %v2376_v46  ;;  %v309_v44 = vld [vmem:[%s2754_s14 + $0x278] sm:$0xff]  ;;  %v310_v46 = vld [vmem:[%s2754_s14 + $0x280] sm:$0xff]  ;;  %v343_v18 = vld [vmem:[%s2754_s14 + $0x388] sm:$0xff] }
  0x36   : > { %1336 = vmatpush.bf16.msrb.mxu2 %v2377_v40  ;;  %1130 = vmatmul.bf16.vlgmr.msra.gmra.mxu3 %v401_v45  ;;  %v307_v40 = vld [vmem:[%s2754_s14 + $0x268] sm:$0xff]  ;;  %v435_v49 = vpack.c.bf16 %v309_v44, %v302_v43  ;;  %v342_v16 = vld [vmem:[%s2754_s14 + $0x380] sm:$0xff]  ;;  %v349_v17 = vld [vmem:[%s2754_s14 + $0x3b8] sm:$0xff] }
  0x37   : > { %v303_v45 = vld [vmem:[%s2754_s14 + $0x248] sm:$0xff]  ;;  %v350_v19 = vld [vmem:[%s2754_s14 + $0x3c0] sm:$0xff]  ;;  %v344_v20 = vld [vmem:[%s2754_s14 + $0x390] sm:$0xff] }
  0x38   : > { %1192 = vmatpush.bf16.msrb.mxu0 %v2367_v47  ;;  %v433_v47 = vpack.c.bf16 %v307_v40, %v300_v39  ;;  %v436_v50 = vpack.c.bf16 %v310_v46, %v303_v45  ;;  %v455_v25 = vpack.c.bf16 %v350_v19, %v343_v18  ;;  %v363_v39 = vld [vmem:[%s2754_s14 + $0x428] sm:$0xff]  ;;  %v2361_v40 = vld [vmem:[%s3394_s1 + $0x100] sm:$0xff]  ;;  %v365_v44 = vld [vmem:[%s2754_s14 + $0x438] sm:$0xff] }
  0x39   : > { %1261 = vmatpush.bf16.msrb.mxu1 %v2375_v48  ;;  %v434_v48 = vpack.c.bf16 %v308_v42, %v301_v41  ;;  %v357_v41 = vld [vmem:[%s2754_s14 + $0x3f8] sm:$0xff]  ;;  %v364_v42 = vld [vmem:[%s2754_s14 + $0x430] sm:$0xff]  ;;  %v358_v43 = vld [vmem:[%s2754_s14 + $0x400] sm:$0xff] }
  0x3a   : > { %v359_v45 = vld [vmem:[%s2754_s14 + $0x408] sm:$0xff]  ;;  %v366_v46 = vld [vmem:[%s2754_s14 + $0x440] sm:$0xff] }
  0x3c   : > { %1193 = vmatpush.bf16.msrb.mxu0 %v2366_v61  ;;  %v440_v61 = vpack.c.bf16 %v321_v54, %v314_v53  ;;  %v463_v53 = vpack.c.bf16 %v365_v44, %v358_v43  ;;  %v464_v54 = vpack.c.bf16 %v366_v46, %v359_v45 }
  0x3d   : > { %1262 = vmatpush.bf16.msrb.mxu1 %v2374_v62  ;;  %v441_v62 = vpack.c.bf16 %v322_v56, %v315_v55  ;;  %v2369_v55 = vld [vmem:[%s3394_s1 + $0x140] sm:$0xff] }
  0x40   : > { %1194 = vmatpush.bf16.msrb.mxu0 %v2365_v11  ;;  %v449_v11 = vpack.c.bf16 %v337_v6, %v330_v5  ;;  %v379_v5 = vld [vmem:[%s2754_s14 + $0x4a8] sm:$0xff]  ;;  %v373_v6 = vld [vmem:[%s2754_s14 + $0x478] sm:$0xff] }
  0x41   : > { %1263 = vmatpush.bf16.msrb.mxu1 %v2373_v12 }
  0x43   : > { %928 = vmatmul.bf16.gmra.mxu0 %v405_v57  ;;  %v316_v57 = vld [vmem:[%s2754_s14 + $0x2b0] sm:$0xff] }
  0x44   : > { %997 = vmatmul.bf16.gmra.mxu1 %v406_v58  ;;  %1195 = vmatpush.bf16.msrb.mxu0 %v2364_v37  ;;  %v323_v58 = vld [vmem:[%s2754_s14 + $0x2e8] sm:$0xff] }
  0x45   : > { %1066 = vmatmul.bf16.gmra.mxu2 %v407_v59  ;;  %1264 = vmatpush.bf16.msrb.mxu1 %v2372_v38  ;;  %v317_v59 = vld [vmem:[%s2754_s14 + $0x2b8] sm:$0xff]  ;;  %v442_v63 = vpack.c.bf16 %v323_v58, %v316_v57  ;;  %v356_v38 = vld [vmem:[%s2754_s14 + $0x3f0] sm:$0xff] }
  0x46   : > { %1135 = vmatmul.bf16.gmra.mxu3 %v408_v60  ;;  %v324_v60 = vld [vmem:[%s2754_s14 + $0x2f0] sm:$0xff] }
  0x47   : > { %v443_v0 = vpack.c.bf16 %v324_v60, %v317_v59 }
  0x48   : > { %1196 = vmatpush.bf16.msrb.mxu0 %v2363_v51 }
  0x49   : > { %1265 = vmatpush.bf16.msrb.mxu1 %v2371_v52 }
  0x4c   : > { %1197 = vmatpush.bf16.msrb.mxu0 %v2362_v13 }
  0x4d   : > { %1266 = vmatpush.bf16.msrb.mxu1 %v2370_v14 }
  0x50   : > { %1198 = vmatpush.bf16.msrb.mxu0 %v2361_v40 }
  0x51   : > { %1267 = vmatpush.bf16.msrb.mxu1 %v2369_v55  ;;  %v236_v55 = vld [vmem:[%s2754_s14 + $0x30] sm:$0xff] }
  0x53   : > { %933 = vmatmul.bf16.gmra.mxu0 %v412_v7  ;;  %v331_v7 = vld [vmem:[%s2754_s14 + $0x328] sm:$0xff] }
  0x54   : > { %1002 = vmatmul.bf16.gmra.mxu1 %v413_v8  ;;  %v338_v8 = vld [vmem:[%s2754_s14 + $0x360] sm:$0xff] }
  0x55   : > { %1071 = vmatmul.bf16.gmra.mxu2 %v414_v9  ;;  %v447_v9 = vpack.c.bf16 %v335_v2, %v328_v1  ;;  %v450_v12 = vpack.c.bf16 %v338_v8, %v331_v7  ;;  %v377_v1 = vld [vmem:[%s2754_s14 + $0x498] sm:$0xff]  ;;  %v371_v2 = vld [vmem:[%s2754_s14 + $0x468] sm:$0xff]  ;;  %v380_v7 = vld [vmem:[%s2754_s14 + $0x4b0] sm:$0xff] }
  0x56   : > { %1140 = vmatmul.bf16.gmra.mxu3 %v415_v10  ;;  %v448_v10 = vpack.c.bf16 %v336_v4, %v329_v3  ;;  %v378_v3 = vld [vmem:[%s2754_s14 + $0x4a0] sm:$0xff]  ;;  %v372_v4 = vld [vmem:[%s2754_s14 + $0x470] sm:$0xff] }
  0x57   : > { %v470_v14 = vpack.c.bf16 %v379_v5, %v372_v4 }
  0x63   : > { %938 = vmatmul.bf16.gmra.mxu0 %v419_v21  ;;  %v351_v21 = vld [vmem:[%s2754_s14 + $0x3c8] sm:$0xff] }
  0x64   : > { %1007 = vmatmul.bf16.gmra.mxu1 %v420_v22  ;;  %v345_v22 = vld [vmem:[%s2754_s14 + $0x398] sm:$0xff]  ;;  %v456_v28 = vpack.c.bf16 %v351_v21, %v344_v20 }
  0x65   : > { %1076 = vmatmul.bf16.gmra.mxu2 %v421_v23  ;;  %v352_v23 = vld [vmem:[%s2754_s14 + $0x3d0] sm:$0xff] }
  0x66   : > { %1145 = vmatmul.bf16.gmra.mxu3 %v422_v24  ;;  %v454_v24 = vpack.c.bf16 %v349_v17, %v342_v16  ;;  %v457_v29 = vpack.c.bf16 %v352_v23, %v345_v22  ;;  %v471_v16 = vpack.c.bf16 %v380_v7, %v373_v6 }
  0x73   : > { %943 = vmatmul.bf16.gmra.mxu0 %v426_v33 }
  0x74   : > { %1012 = vmatmul.bf16.gmra.mxu1 %v427_v34 }
  0x75   : > { %1081 = vmatmul.bf16.gmra.mxu2 %v428_v35 }
  0x76   : > { %1150 = vmatmul.bf16.gmra.mxu3 %v429_v36 }
  0x83   : > { %948 = vmatmul.bf16.gmra.mxu0 %v433_v47 }
  0x84   : > { %1017 = vmatmul.bf16.gmra.mxu1 %v434_v48  ;;  %v461_v48 = vpack.c.bf16 %v363_v39, %v356_v38 }
  0x85   : > { %1086 = vmatmul.bf16.gmra.mxu2 %v435_v49  ;;  %v462_v49 = vpack.c.bf16 %v364_v42, %v357_v41 }
  0x86   : > { %1155 = vmatmul.bf16.gmra.mxu3 %v436_v50 }
  0x93   : > { %953 = vmatmul.bf16.gmra.mxu0 %v440_v61 }
  0x94   : > { %1022 = vmatmul.bf16.gmra.mxu1 %v441_v62 }
  0x95   : > { %1091 = vmatmul.bf16.gmra.mxu2 %v442_v63 }
  0x96   : > { %1160 = vmatmul.bf16.gmra.mxu3 %v443_v0  ;;  %v370_v0 = vld [vmem:[%s2754_s14 + $0x460] sm:$0xff] }
  0xa3   : > { %958 = vmatmul.bf16.gmra.mxu0 %v447_v9  ;;  %v468_v9 = vpack.c.bf16 %v377_v1, %v370_v0 }
  0xa4   : > { %1027 = vmatmul.bf16.gmra.mxu1 %v448_v10  ;;  %v469_v10 = vpack.c.bf16 %v378_v3, %v371_v2 }
  0xa5   : > { %1096 = vmatmul.bf16.gmra.mxu2 %v449_v11 }
  0xa6   : > { %1165 = vmatmul.bf16.gmra.mxu3 %v450_v12 }
  0xb0   : > { %v924_v26 = vpop.f32.mrf.mxu0 }
  0xb1   : > { %v993_v27 = vpop.f32.mrf.mxu1  ;;  %v925_v30 = vadd.f32 %v2886_v15, %v924_v26  ;;  %v391_v26 = vld [vmem:[%s2754_s14 + $0x508] sm:$0xff] }
  0xb3   : > { %v994_v31 = vadd.f32 %v993_v27, %v925_v30  ;;  %963 = vmatmul.bf16.gmra.mxu0 %v454_v24  ;;  %v385_v27 = vld [vmem:[%s2754_s14 + $0x4d8] sm:$0xff] }
  0xb4   : > { %1032 = vmatmul.bf16.gmra.mxu1 %v455_v25  ;;  %v384_v25 = vld [vmem:[%s2754_s14 + $0x4d0] sm:$0xff]  ;;  %v393_v30 = vld [vmem:[%s2754_s14 + $0x518] sm:$0xff] }
  0xb5   : > { %1101 = vmatmul.bf16.gmra.mxu2 %v456_v28  ;;  %v392_v28 = vld [vmem:[%s2754_s14 + $0x510] sm:$0xff] }
  0xb6   : > { %1170 = vmatmul.bf16.gmra.mxu3 %v457_v29  ;;  %v386_v29 = vld [vmem:[%s2754_s14 + $0x4e0] sm:$0xff] }
  0xb7   : > { %v477_v40 = vpack.c.bf16 %v393_v30, %v386_v29 }
  0xb8   : > { %v1062_v32 = vpop.f32.mrf.mxu2  ;;  %v926_v34 = vpop.f32.mrf.mxu0 }
  0xb9   : > { %v2897_v33 = vadd.f32 %v1062_v32, %v994_v31  ;;  %v995_v35 = vpop.f32.mrf.mxu1  ;;  %v927_v36 = vadd.f32 %v2886_v15, %v926_v34  ;;  %v387_v31 = vld [vmem:[%s2754_s14 + $0x4e8] sm:$0xff]  ;;  %v394_v32 = vld [vmem:[%s2754_s14 + $0x520] sm:$0xff] }
  0xba   : > { %v478_v41 = vpack.c.bf16 %v394_v32, %v387_v31 }
  0xbb   : > { %v996_v37 = vadd.f32 %v995_v35, %v927_v36  ;;  %v475_v35 = vpack.c.bf16 %v391_v26, %v384_v25  ;;  %v476_v36 = vpack.c.bf16 %v392_v28, %v385_v27 }
  0xc0   : > { %v1064_v47 = vpop.f32.mrf.mxu2  ;;  %v929_v51 = vpop.f32.mrf.mxu0 }
  0xc1   : > { %v2911_v50 = vadd.f32 %v1064_v47, %v996_v37  ;;  %v998_v52 = vpop.f32.mrf.mxu1  ;;  %v930_v56 = vadd.f32 %v2886_v15, %v929_v51  ;;  %v234_v51 = vld [vmem:[%s2754_s14 + $0x20] sm:$0xff] }
  0xc3   : > { %v999_v57 = vadd.f32 %v998_v52, %v930_v56  ;;  %968 = vmatmul.bf16.gmra.mxu0 %v461_v48  ;;  %v241_v52 = vld [vmem:[%s2754_s14 + $0x58] sm:$0xff]  ;;  %v243_v56 = vld [vmem:[%s2754_s14 + $0x68] sm:$0xff] }
  0xc4   : > { %1037 = vmatmul.bf16.gmra.mxu1 %v462_v49  ;;  %v404_v0 = vpack.c.bf16 %v243_v56, %v236_v55 }
  0xc5   : > { %1106 = vmatmul.bf16.gmra.mxu2 %v463_v53  ;;  %v235_v53 = vld [vmem:[%s2754_s14 + $0x28] sm:$0xff] }
  0xc6   : > { %1175 = vmatmul.bf16.gmra.mxu3 %v464_v54  ;;  %v242_v54 = vld [vmem:[%s2754_s14 + $0x60] sm:$0xff] }
  0xc8   : > { %v1067_v58 = vpop.f32.mrf.mxu2  ;;  %v931_v60 = vpop.f32.mrf.mxu0 }
  0xc9   : > { %v2917_v59 = vadd.f32 %v1067_v58, %v999_v57  ;;  %v1000_v61 = vpop.f32.mrf.mxu1  ;;  %v932_v62 = vadd.f32 %v2886_v15, %v931_v60  ;;  %v402_v58 = vpack.c.bf16 %v241_v52, %v234_v51  ;;  %v403_v60 = vpack.c.bf16 %v242_v54, %v235_v53 }
  0xcb   : > { %v1001_v63 = vadd.f32 %v1000_v61, %v932_v62 }
  0xd0   : > { %v1069_v8 = vpop.f32.mrf.mxu2  ;;  %v934_v12 = vpop.f32.mrf.mxu0 }
  0xd1   : > { %v2928_v11 = vadd.f32 %v1069_v8, %v1001_v63  ;;  %v1003_v13 = vpop.f32.mrf.mxu1  ;;  %v935_v17 = vadd.f32 %v2886_v15, %v934_v12  ;;  %v249_v12 = vld [vmem:[%s2754_s14 + $0x98] sm:$0xff] }
  0xd3   : > { %v1004_v18 = vadd.f32 %v1003_v13, %v935_v17  ;;  %973 = vmatmul.bf16.gmra.mxu0 %v468_v9  ;;  %v248_v9 = vld [vmem:[%s2754_s14 + $0x90] sm:$0xff] }
  0xd4   : > { %1042 = vmatmul.bf16.gmra.mxu1 %v469_v10  ;;  %v255_v10 = vld [vmem:[%s2754_s14 + $0xc8] sm:$0xff]  ;;  %v256_v13 = vld [vmem:[%s2754_s14 + $0xd0] sm:$0xff] }
  0xd5   : > { %1111 = vmatmul.bf16.gmra.mxu2 %v470_v14  ;;  %v250_v14 = vld [vmem:[%s2754_s14 + $0xa0] sm:$0xff] }
  0xd6   : > { %1180 = vmatmul.bf16.gmra.mxu3 %v471_v16  ;;  %v257_v16 = vld [vmem:[%s2754_s14 + $0xd8] sm:$0xff] }
  0xd8   : > { %v1072_v19 = vpop.f32.mrf.mxu2  ;;  %v936_v21 = vpop.f32.mrf.mxu0 }
  0xd9   : > { %v2931_v20 = vadd.f32 %v1072_v19, %v1004_v18  ;;  %v1005_v22 = vpop.f32.mrf.mxu1  ;;  %v937_v23 = vadd.f32 %v2886_v15, %v936_v21  ;;  %v409_v18 = vpack.c.bf16 %v255_v10, %v248_v9  ;;  %v410_v19 = vpack.c.bf16 %v256_v13, %v249_v12 }
  0xdb   : > { %v1006_v24 = vadd.f32 %v1005_v22, %v937_v23 }
  0xe0   : > { %v1074_v34 = vpop.f32.mrf.mxu2  ;;  %v939_v38 = vpop.f32.mrf.mxu0 }
  0xe1   : > { %v2942_v37 = vadd.f32 %v1074_v34, %v1006_v24  ;;  %v1008_v39 = vpop.f32.mrf.mxu1  ;;  %v940_v42 = vadd.f32 %v2886_v15, %v939_v38  ;;  %v411_v24 = vpack.c.bf16 %v257_v16, %v250_v14  ;;  %v262_v34 = vld [vmem:[%s2754_s14 + $0x100] sm:$0xff] }
  0xe2   : > { %v270_v38 = vld [vmem:[%s2754_s14 + $0x140] sm:$0xff] }
  0xe3   : > { %v1009_v43 = vadd.f32 %v1008_v39, %v940_v42  ;;  %978 = vmatmul.bf16.gmra.mxu0 %v475_v35  ;;  %v269_v35 = vld [vmem:[%s2754_s14 + $0x138] sm:$0xff]  ;;  %v264_v39 = vld [vmem:[%s2754_s14 + $0x110] sm:$0xff] }
  0xe4   : > { %1047 = vmatmul.bf16.gmra.mxu1 %v476_v36  ;;  %v263_v36 = vld [vmem:[%s2754_s14 + $0x108] sm:$0xff]  ;;  %v416_v42 = vpack.c.bf16 %v269_v35, %v262_v34 }
  0xe5   : > { %1116 = vmatmul.bf16.gmra.mxu2 %v477_v40  ;;  %v271_v40 = vld [vmem:[%s2754_s14 + $0x148] sm:$0xff] }
  0xe6   : > { %1185 = vmatmul.bf16.gmra.mxu3 %v478_v41 }
  0xe8   : > { %v1077_v44 = vpop.f32.mrf.mxu2  ;;  %v941_v46 = vpop.f32.mrf.mxu0 }
  0xe9   : > { %v2945_v45 = vadd.f32 %v1077_v44, %v1009_v43  ;;  %v1010_v47 = vpop.f32.mrf.mxu1  ;;  %v942_v48 = vadd.f32 %v2886_v15, %v941_v46  ;;  %v417_v43 = vpack.c.bf16 %v270_v38, %v263_v36 }
  0xeb   : > { %v1011_v49 = vadd.f32 %v1010_v47, %v942_v48  ;;  %v418_v48 = vpack.c.bf16 %v271_v40, %v264_v39 }
  0xf0   : > { %v1079_v57 = vpop.f32.mrf.mxu2  ;;  %v944_v62 = vpop.f32.mrf.mxu0 }
  0xf1   : > { %v2954_v61 = vadd.f32 %v1079_v57, %v1011_v49  ;;  %v1013_v63 = vpop.f32.mrf.mxu1  ;;  %v945_v1 = vadd.f32 %v2886_v15, %v944_v62  ;;  %v277_v62 = vld [vmem:[%s2754_s14 + $0x178] sm:$0xff] }
  0xf3   : > { %v1014_v2 = vadd.f32 %v1013_v63, %v945_v1  ;;  %1199 = vmatmul.bf16.vlgmr.msrb.gmra.mxu0 %v402_v58  ;;  %v276_v58 = vld [vmem:[%s2754_s14 + $0x170] sm:$0xff]  ;;  %v285_v1 = vld [vmem:[%s2754_s14 + $0x1b8] sm:$0xff] }
  0xf4   : > { %1268 = vmatmul.bf16.vlgmr.msrb.gmra.mxu1 %v403_v60  ;;  %v283_v60 = vld [vmem:[%s2754_s14 + $0x1a8] sm:$0xff]  ;;  %v284_v63 = vld [vmem:[%s2754_s14 + $0x1b0] sm:$0xff] }
  0xf5   : > { %2282 = vmatmul.msk.bf16.vlgmr.msrb.gmra.mxu2 %vm878_vm0, %v404_v0  ;;  %v278_v0 = vld [vmem:[%s2754_s14 + $0x180] sm:$0xff] }
  0xf6   : > { %v425_v9 = vpack.c.bf16 %v285_v1, %v278_v0 }
  0xf8   : > { %v1082_v3 = vpop.f32.mrf.mxu2  ;;  %v946_v5 = vpop.f32.mrf.mxu0 }
  0xf9   : > { %v2958_v4 = vadd.f32 %v1082_v3, %v1014_v2  ;;  %v1015_v6 = vpop.f32.mrf.mxu1  ;;  %v947_v7 = vadd.f32 %v2886_v15, %v946_v5  ;;  %v423_v3 = vpack.c.bf16 %v283_v60, %v276_v58  ;;  %v424_v5 = vpack.c.bf16 %v284_v63, %v277_v62 }
  0xfb   : > { %v1016_v8 = vadd.f32 %v1015_v6, %v947_v7 }
 0x100   : > { %v1084_v17 = vpop.f32.mrf.mxu2  ;;  %v949_v22 = vpop.f32.mrf.mxu0 }
 0x101   : > { %v2967_v21 = vadd.f32 %v1084_v17, %v1016_v8  ;;  %v1018_v23 = vpop.f32.mrf.mxu1  ;;  %v950_v25 = vadd.f32 %v2886_v15, %v949_v22  ;;  %v290_v22 = vld [vmem:[%s2754_s14 + $0x1e0] sm:$0xff] }
 0x103   : > { %v1019_v26 = vadd.f32 %v1018_v23, %v950_v25  ;;  %1204 = vmatmul.bf16.gmra.mxu0 %v409_v18  ;;  %v297_v23 = vld [vmem:[%s2754_s14 + $0x218] sm:$0xff]  ;;  %v298_v25 = vld [vmem:[%s2754_s14 + $0x220] sm:$0xff] }
 0x104   : > { %1273 = vmatmul.bf16.gmra.mxu1 %v410_v19 }
 0x105   : > { %2283 = vmatmul.msk.bf16.gmra.mxu2 %vm878_vm0, %v411_v24  ;;  %v291_v24 = vld [vmem:[%s2754_s14 + $0x1e8] sm:$0xff] }
 0x108   : > { %v1087_v27 = vpop.f32.mrf.mxu2  ;;  %v951_v29 = vpop.f32.mrf.mxu0 }
 0x109   : > { %v2971_v28 = vadd.f32 %v1087_v27, %v1019_v26  ;;  %v1020_v30 = vpop.f32.mrf.mxu1  ;;  %v952_v31 = vadd.f32 %v2886_v15, %v951_v29  ;;  %v292_v26 = vld [vmem:[%s2754_s14 + $0x1f0] sm:$0xff]  ;;  %v299_v27 = vld [vmem:[%s2754_s14 + $0x228] sm:$0xff] }
 0x10a   : > { %v432_v36 = vpack.c.bf16 %v299_v27, %v292_v26 }
 0x10b   : > { %v1021_v32 = vadd.f32 %v1020_v30, %v952_v31  ;;  %v430_v30 = vpack.c.bf16 %v297_v23, %v290_v22  ;;  %v431_v31 = vpack.c.bf16 %v298_v25, %v291_v24  ;;  %v326_v22 = vld [vmem:[%s2754_s14 + $0x300] sm:$0xff]  ;;  %v320_v23 = vld [vmem:[%s2754_s14 + $0x2d0] sm:$0xff]  ;;  %v327_v24 = vld [vmem:[%s2754_s14 + $0x308] sm:$0xff] }
 0x110   : > { %v1089_v41 = vpop.f32.mrf.mxu2  ;;  %v954_v46 = vpop.f32.mrf.mxu0 }
 0x111   : > { %v2980_v44 = vadd.f32 %v1089_v41, %v1021_v32  ;;  %v1023_v47 = vpop.f32.mrf.mxu1  ;;  %v955_v49 = vadd.f32 %v2886_v15, %v954_v46 }
 0x113   : > { %v1024_v51 = vadd.f32 %v1023_v47, %v955_v49  ;;  %1209 = vmatmul.bf16.gmra.mxu0 %v416_v42  ;;  %v2385_v49 = vld [vmem:[%s3396_s3 + $0x38] sm:$0xff] }
 0x114   : > { %1278 = vmatmul.bf16.gmra.mxu1 %v417_v43  ;;  %1910 = vmatpush.bf16.msrb.mxu3 %v2385_v49 }
 0x115   : > { %2284 = vmatmul.msk.bf16.gmra.mxu2 %vm878_vm0, %v418_v48  ;;  %v304_v48 = vld [vmem:[%s2754_s14 + $0x250] sm:$0xff] }
 0x118   : > { %v1092_v52 = vpop.f32.mrf.mxu2  ;;  %v956_v54 = vpop.f32.mrf.mxu0 }
 0x119   : > { %v2984_v53 = vadd.f32 %v1092_v52, %v1024_v51  ;;  %v1025_v55 = vpop.f32.mrf.mxu1  ;;  %v957_v56 = vadd.f32 %v2886_v15, %v956_v54  ;;  %v311_v51 = vld [vmem:[%s2754_s14 + $0x288] sm:$0xff]  ;;  %v305_v52 = vld [vmem:[%s2754_s14 + $0x258] sm:$0xff]  ;;  %v312_v54 = vld [vmem:[%s2754_s14 + $0x290] sm:$0xff] }
 0x11a   : > { %v437_v60 = vpack.c.bf16 %v311_v51, %v304_v48  ;;  %v438_v62 = vpack.c.bf16 %v312_v54, %v305_v52  ;;  %v332_v51 = vld [vmem:[%s2754_s14 + $0x330] sm:$0xff]  ;;  %v339_v52 = vld [vmem:[%s2754_s14 + $0x368] sm:$0xff]  ;;  %v333_v54 = vld [vmem:[%s2754_s14 + $0x338] sm:$0xff] }
 0x11b   : > { %v1026_v57 = vadd.f32 %v1025_v55, %v957_v56  ;;  %v3020_v55 = vpop.f32.mrf.mxu3  ;;  %v306_v56 = vld [vmem:[%s2754_s14 + $0x260] sm:$0xff] }
 0x120   : > { %v1094_v2 = vpop.f32.mrf.mxu2  ;;  %v959_v7 = vpop.f32.mrf.mxu0 }
 0x121   : > { %v2993_v6 = vadd.f32 %v1094_v2, %v1026_v57  ;;  %v1028_v8 = vpop.f32.mrf.mxu1  ;;  %v960_v10 = vadd.f32 %v2886_v15, %v959_v7  ;;  %v313_v57 = vld [vmem:[%s2754_s14 + $0x298] sm:$0xff] }
 0x122   : > { %v439_v2 = vpack.c.bf16 %v313_v57, %v306_v56  ;;  %v340_v56 = vld [vmem:[%s2754_s14 + $0x370] sm:$0xff]  ;;  %v334_v57 = vld [vmem:[%s2754_s14 + $0x340] sm:$0xff] }
 0x123   : > { %v1029_v12 = vadd.f32 %v1028_v8, %v960_v10  ;;  %1214 = vmatmul.bf16.gmra.mxu0 %v423_v3  ;;  %v3028_v7 = vpop.f32.mrf.mxu3 }
 0x124   : > { %1283 = vmatmul.bf16.gmra.mxu1 %v424_v5 }
 0x125   : > { %2285 = vmatmul.msk.bf16.gmra.mxu2 %vm878_vm0, %v425_v9 }
 0x128   : > { %v1097_v13 = vpop.f32.mrf.mxu2  ;;  %v961_v16 = vpop.f32.mrf.mxu0 }
 0x129   : > { %v2997_v14 = vadd.f32 %v1097_v13, %v1029_v12  ;;  %v1030_v17 = vpop.f32.mrf.mxu1  ;;  %v962_v18 = vadd.f32 %v2886_v15, %v961_v16 }
 0x12b   : > { %v1031_v19 = vadd.f32 %v1030_v17, %v962_v18  ;;  %v318_v17 = vld [vmem:[%s2754_s14 + $0x2c0] sm:$0xff]  ;;  %v325_v18 = vld [vmem:[%s2754_s14 + $0x2f8] sm:$0xff] }
 0x12c   : > { %v444_v26 = vpack.c.bf16 %v325_v18, %v318_v17 }
 0x130   : > { %v1099_v29 = vpop.f32.mrf.mxu2  ;;  %v964_v34 = vpop.f32.mrf.mxu0 }
 0x131   : > { %v3006_v32 = vadd.f32 %v1099_v29, %v1031_v19  ;;  %v1033_v35 = vpop.f32.mrf.mxu1  ;;  %v965_v38 = vadd.f32 %v2886_v15, %v964_v34  ;;  %v319_v19 = vld [vmem:[%s2754_s14 + $0x2c8] sm:$0xff]  ;;  %v446_v34 = vpack.c.bf16 %v327_v24, %v320_v23  ;;  %v346_v23 = vld [vmem:[%s2754_s14 + $0x3a0] sm:$0xff] }
 0x132   : > { %v445_v27 = vpack.c.bf16 %v326_v22, %v319_v19  ;;  %v2383_v24 = vld [vmem:[%s3396_s3 + $0x28] sm:$0xff] }
 0x133   : > { %v1034_v39 = vadd.f32 %v1033_v35, %v965_v38  ;;  %1219 = vmatmul.bf16.gmra.mxu0 %v430_v30  ;;  %v3041_v35 = vpop.f32.mrf.mxu3 }
 0x134   : > { %1288 = vmatmul.bf16.gmra.mxu1 %v431_v31 }
 0x135   : > { %2286 = vmatmul.msk.bf16.gmra.mxu2 %vm878_vm0, %v432_v36 }
 0x138   : > { %v1102_v40 = vpop.f32.mrf.mxu2  ;;  %v966_v42 = vpop.f32.mrf.mxu0 }
 0x139   : > { %v3010_v41 = vadd.f32 %v1102_v40, %v1034_v39  ;;  %v1035_v43 = vpop.f32.mrf.mxu1  ;;  %v967_v46 = vadd.f32 %v2886_v15, %v966_v42  ;;  %v2384_v39 = vld [vmem:[%s3396_s3 + $0x30] sm:$0xff] }
 0x13a   : > { %1911 = vmatpush.bf16.msrb.mxu3 %v2384_v39 }
 0x13b   : > { %v1036_v47 = vadd.f32 %v1035_v43, %v967_v46  ;;  %v3051_v48 = vpop.f32.mrf.mxu3 }
 0x13e   : > { %1912 = vmatpush.bf16.msrb.mxu3 %v2383_v24 }
 0x140   : > { %v1104_v58 = vpop.f32.mrf.mxu2  ;;  %v969_v0 = vpop.f32.mrf.mxu0 }
 0x141   : > { %v3024_v63 = vadd.f32 %v1104_v58, %v1036_v47  ;;  %v1038_v1 = vpop.f32.mrf.mxu1  ;;  %v970_v3 = vadd.f32 %v2886_v15, %v969_v0  ;;  %v341_v58 = vld [vmem:[%s2754_s14 + $0x378] sm:$0xff]  ;;  %v452_v0 = vpack.c.bf16 %v340_v56, %v333_v54 }
 0x143   : > { %v1039_v5 = vadd.f32 %v1038_v1, %v970_v3  ;;  %1224 = vmatmul.bf16.gmra.mxu0 %v437_v60 }
 0x144   : > { %1293 = vmatmul.bf16.gmra.mxu1 %v438_v62  ;;  %v451_v62 = vpack.c.bf16 %v339_v52, %v332_v51 }
 0x145   : > { %2287 = vmatmul.msk.bf16.gmra.mxu2 %vm878_vm0, %v439_v2 }
 0x148   : > { %v1107_v8 = vpop.f32.mrf.mxu2  ;;  %v971_v10 = vpop.f32.mrf.mxu0 }
 0x149   : > { %v3030_v9 = vadd.f32 %v1107_v8, %v1039_v5  ;;  %v1040_v12 = vpop.f32.mrf.mxu1  ;;  %v972_v13 = vadd.f32 %v2886_v15, %v971_v10  ;;  %v453_v5 = vpack.c.bf16 %v341_v58, %v334_v57 }
 0x14b   : > { %v1041_v16 = vadd.f32 %v1040_v12, %v972_v13  ;;  %v3063_v12 = vpop.f32.mrf.mxu3 }
 0x150   : > { %v1109_v25 = vpop.f32.mrf.mxu2  ;;  %v974_v30 = vpop.f32.mrf.mxu0 }
 0x151   : > { %v3039_v29 = vadd.f32 %v1109_v25, %v1041_v16  ;;  %v1043_v31 = vpop.f32.mrf.mxu1  ;;  %v975_v36 = vadd.f32 %v2886_v15, %v974_v30  ;;  %v353_v25 = vld [vmem:[%s2754_s14 + $0x3d8] sm:$0xff]  ;;  %v348_v30 = vld [vmem:[%s2754_s14 + $0x3b0] sm:$0xff] }
 0x153   : > { %v1044_v38 = vadd.f32 %v1043_v31, %v975_v36  ;;  %1229 = vmatmul.bf16.gmra.mxu0 %v444_v26  ;;  %v347_v26 = vld [vmem:[%s2754_s14 + $0x3a8] sm:$0xff] }
 0x154   : > { %1298 = vmatmul.bf16.gmra.mxu1 %v445_v27  ;;  %v354_v27 = vld [vmem:[%s2754_s14 + $0x3e0] sm:$0xff]  ;;  %v355_v31 = vld [vmem:[%s2754_s14 + $0x3e8] sm:$0xff] }
 0x155   : > { %2288 = vmatmul.msk.bf16.gmra.mxu2 %vm878_vm0, %v446_v34  ;;  %v3077_v34 = vpop.f32.mrf.mxu3  ;;  %v459_v39 = vpack.c.bf16 %v354_v27, %v347_v26  ;;  %v2382_v27 = vld [vmem:[%s3396_s3 + $0x20] sm:$0xff] }
 0x156   : > { %1913 = vmatpush.bf16.msrb.mxu3 %v2382_v27  ;;  %v395_v27 = vld [vmem:[%s2754_s14 + $0x528] sm:$0xff] }
 0x158   : > { %v1112_v40 = vpop.f32.mrf.mxu2  ;;  %v976_v43 = vpop.f32.mrf.mxu0 }
 0x159   : > { %v3048_v42 = vadd.f32 %v1112_v40, %v1044_v38  ;;  %v1045_v46 = vpop.f32.mrf.mxu1  ;;  %v977_v47 = vadd.f32 %v2886_v15, %v976_v43  ;;  %v458_v38 = vpack.c.bf16 %v353_v25, %v346_v23 }
 0x15b   : > { %v1046_v49 = vadd.f32 %v1045_v46, %v977_v47  ;;  %v460_v47 = vpack.c.bf16 %v355_v31, %v348_v30  ;;  %v1139_v31 = vadd.f32 %v3051_v48, %v2928_v11 }
 0x15d   : > { %v3086_v57 = vpop.f32.mrf.mxu3 }
 0x160   : > { %v1114_v60 = vpop.f32.mrf.mxu2  ;;  %v979_v2 = vpop.f32.mrf.mxu0 }
 0x161   : > { %v3059_v1 = vadd.f32 %v1114_v60, %v1046_v49  ;;  %v1048_v3 = vpop.f32.mrf.mxu1  ;;  %v980_v8 = vadd.f32 %v2886_v15, %v979_v2  ;;  %v360_v60 = vld [vmem:[%s2754_s14 + $0x410] sm:$0xff] }
 0x162   : > { %v368_v2 = vld [vmem:[%s2754_s14 + $0x450] sm:$0xff] }
 0x163   : > { %v1049_v10 = vadd.f32 %v1048_v3, %v980_v8  ;;  %1234 = vmatmul.bf16.gmra.mxu0 %v451_v62  ;;  %v367_v62 = vld [vmem:[%s2754_s14 + $0x448] sm:$0xff]  ;;  %v362_v3 = vld [vmem:[%s2754_s14 + $0x420] sm:$0xff] }
 0x164   : > { %1303 = vmatmul.bf16.gmra.mxu1 %v452_v0  ;;  %v361_v0 = vld [vmem:[%s2754_s14 + $0x418] sm:$0xff] }
 0x165   : > { %2289 = vmatmul.msk.bf16.gmra.mxu2 %vm878_vm0, %v453_v5  ;;  %v369_v5 = vld [vmem:[%s2754_s14 + $0x458] sm:$0xff]  ;;  %v3100_v26 = vpop.f32.mrf.mxu3 }
 0x166   : > { %v467_v23 = vpack.c.bf16 %v369_v5, %v362_v3 }
 0x168   : > { %v1117_v13 = vpop.f32.mrf.mxu2  ;;  %v981_v17 = vpop.f32.mrf.mxu0 }
 0x169   : > { %v3065_v16 = vadd.f32 %v1117_v13, %v1049_v10  ;;  %v1050_v18 = vpop.f32.mrf.mxu1  ;;  %v982_v19 = vadd.f32 %v2886_v15, %v981_v17  ;;  %v1132_v15 = vadd.f32 %v3020_v55, %v2897_v33  ;;  %v1134_v33 = vadd.f32 %v3028_v7, %v2911_v50 }
 0x16a   : > { %v465_v13 = vpack.c.bf16 %v367_v62, %v360_v60  ;;  %v1137_v50 = vadd.f32 %v3041_v35, %v2917_v59 }
 0x16b   : > { %v1051_v22 = vadd.f32 %v1050_v18, %v982_v19 }
 0x170   : > { %v1119_v36 = vpop.f32.mrf.mxu2  ;;  %v1200_v43 = vpop.f32.mrf.mxu0 }
 0x171   : > { %v3081_v40 = vadd.f32 %v1119_v36, %v1051_v22  ;;  %v1269_v46 = vpop.f32.mrf.mxu1  ;;  %v1201_v49 = vadd.f32 %v1200_v43, %v1132_v15  ;;  %v466_v22 = vpack.c.bf16 %v368_v2, %v361_v0 }
 0x173   : > { %1239 = vmatmul.bf16.gmra.mxu0 %v458_v38  ;;  %v1270_v51 = vadd.f32 %v1269_v46, %v1201_v49  ;;  %v374_v46 = vld [vmem:[%s2754_s14 + $0x480] sm:$0xff]  ;;  %v375_v49 = vld [vmem:[%s2754_s14 + $0x488] sm:$0xff] }
 0x174   : > { %1308 = vmatmul.bf16.gmra.mxu1 %v459_v39 }
 0x175   : > { %2290 = vmatmul.msk.bf16.gmra.mxu2 %vm878_vm0, %v460_v47  ;;  %v381_v47 = vld [vmem:[%s2754_s14 + $0x4b8] sm:$0xff] }
 0x176   : > { %v472_v11 = vpack.c.bf16 %v381_v47, %v374_v46 }
 0x178   : > { %v1338_v52 = vpop.f32.mrf.mxu2  ;;  %v1202_v54 = vpop.f32.mrf.mxu0 }
 0x179   : > { %v1339_v55 = vadd.f32 %v1338_v52, %v1270_v51  ;;  %v1271_v56 = vpop.f32.mrf.mxu1  ;;  %v1203_v58 = vadd.f32 %v1202_v54, %v1134_v33  ;;  %v3115_v51 = vpop.f32.mrf.mxu3  ;;  %v382_v52 = vld [vmem:[%s2754_s14 + $0x4c0] sm:$0xff]  ;;  %v376_v33 = vld [vmem:[%s2754_s14 + $0x490] sm:$0xff] }
 0x17a   : > { %v473_v2 = vpack.c.bf16 %v382_v52, %v375_v49 }
 0x17b   : > { %2432 = vtanh.f32 %v1339_v55  ;;  %v1272_v8 = vadd.f32 %v1271_v56, %v1203_v58  ;;  %v383_v55 = vld [vmem:[%s2754_s14 + $0x4c8] sm:$0xff]  ;;  %v1142_v58 = vadd.f32 %v3063_v12, %v2931_v20 }
 0x17c   : > { %v474_v3 = vpack.c.bf16 %v383_v55, %v376_v33 }
 0x180   : > { %v1340_v10 = vpop.f32.mrf.mxu2  ;;  %v1205_v18 = vpop.f32.mrf.mxu0 }
 0x181   : > { %v3094_v17 = vpop.eup %2432  ;;  %v1341_v7 = vadd.f32 %v1340_v10, %v1272_v8  ;;  %v1274_v19 = vpop.f32.mrf.mxu1  ;;  %v1206_v25 = vadd.f32 %v1205_v18, %v1137_v50  ;;  %v1144_v50 = vadd.f32 %v3077_v34, %v2942_v37 }
 0x182   : > { %v1422_v24 = vmul.f32 %v3094_v17, %v3094_v17  ;;  %v3127_v20 = vpop.f32.mrf.mxu3 }
 0x183   : > { %2434 = vtanh.f32 %v1341_v7  ;;  %1244 = vmatmul.bf16.gmra.mxu0 %v465_v13  ;;  %v1275_v59 = vadd.f32 %v1274_v19, %v1206_v25  ;;  %v388_v25 = vld [vmem:[%s2754_s14 + $0x4f0] sm:$0xff] }
 0x184   : > { %1446 = vadd.xlane.f32.xlu0 %v1422_v24  ;;  %1313 = vmatmul.bf16.gmra.mxu1 %v466_v22  ;;  %v2381_v24 = vld [vmem:[%s3396_s3 + $0x18] sm:$0xff] }
 0x185   : > { %2291 = vmatmul.msk.bf16.gmra.mxu2 %vm878_vm0, %v467_v23  ;;  %1914 = vmatpush.bf16.msrb.mxu3 %v2381_v24 }
 0x188   : > { %v1343_v35 = vpop.f32.mrf.mxu2  ;;  %v1207_v38 = vpop.f32.mrf.mxu0 }
 0x189   : > { %v3106_v30 = vpop.eup %2434  ;;  %v1344_v36 = vadd.f32 %v1343_v35, %v1275_v59  ;;  %v1276_v39 = vpop.f32.mrf.mxu1  ;;  %v1208_v43 = vadd.f32 %v1207_v38, %v1139_v31  ;;  %v389_v59 = vld [vmem:[%s2754_s14 + $0x4f8] sm:$0xff]  ;;  %v396_v35 = vld [vmem:[%s2754_s14 + $0x530] sm:$0xff]  ;;  %v390_v31 = vld [vmem:[%s2754_s14 + $0x500] sm:$0xff]  ;;  %v479_v38 = vpack.c.bf16 %v395_v27, %v388_v25 }
 0x18a   : > { %v1423_v15 = vmul.f32 %v3106_v30, %v3106_v30  ;;  %v480_v49 = vpack.c.bf16 %v396_v35, %v389_v59  ;;  %v1156_v33 = vpop.f32.mrf.mxu3 }
 0x18b   : > { %2436 = vtanh.f32 %v1344_v36  ;;  %v1277_v54 = vadd.f32 %v1276_v39, %v1208_v43  ;;  %v397_v36 = vld [vmem:[%s2754_s14 + $0x538] sm:$0xff]  ;;  %s2018_s14 = sshll.u32 %s2015_s11, 4  ;;  %s2019_s14 = int_to_ptr.hbm [resolvable:$true] %s2018_s14 }
 0x18c   : > { %1448 = vadd.xlane.f32.xlu0 %v1423_v15  ;;  %v1147_v15 = vadd.f32 %v3086_v57, %v2945_v45  ;;  %v481_v52 = vpack.c.bf16 %v397_v36, %v390_v31  ;;  %v1149_v45 = vadd.f32 %v3100_v26, %v2954_v61  ;;  %s2542_s22 = sshra.s32 %s2019_s14, 4  ;;  %s2543_s22 = int_to_ptr.hbm [resolvable:$true] %s2542_s22 }
 0x18d   : > { %s2544_s13 = scalar_lea.hbm %s2543_s22, 192  ;;  %p2549_p0 = scmp.lt.s32.totalorder %s2543_s22, %s3398_s5 }
 0x18e   : > { %p2545_p11 = scmp.ne.s32.totalorder %s2543_s22, %s2544_s13  ;;  %p2550_p1 = scmp.lt.s32.totalorder %s2548_s17, %s2544_s13 }
 0x190   : > { %v1345_v56 = vpop.f32.mrf.mxu2  ;;  %v1210_v62 = vpop.f32.mrf.mxu0  ;;  %p2546_p12 = pnand %p2545_p11, %p2662_p5  ;;  %p2551_p2 = por %p2550_p1, %p2549_p0 }
 0x191   : > { %v3120_v48 = vpop.eup %2436  ;;  %v1346_v60 = vadd.f32 %v1345_v56, %v1277_v54  ;;  %v1279_v0 = vpop.f32.mrf.mxu1  ;;  %v1211_v8 = vadd.f32 %v1210_v62, %v1142_v58 }
 0x192   : > { %v1424_v5 = vmul.f32 %v3120_v48, %v3120_v48  ;;  %p2547_p13 = pneg %p2546_p12 }
 0x193   : > { %2438 = vtanh.f32 %v1346_v60  ;;  %1249 = vmatmul.bf16.gmra.mxu0 %v472_v11  ;;  %v1280_v10 = vadd.f32 %v1279_v0, %v1211_v8 }
 0x194   : > { %1450 = vadd.xlane.f32.xlu1 %v1424_v5  ;;  %1318 = vmatmul.bf16.gmra.mxu1 %v473_v2  ;;  %p2552_p3 = pnand %p2551_p2, %p2547_p13 }
 0x195   : > { %2292 = vmatmul.msk.bf16.gmra.mxu2 %vm878_vm0, %v474_v3  ;;  %v1158_v3 = vpop.f32.mrf.mxu3 }
 0x198   : > { %v1348_v12 = vpop.f32.mrf.mxu2  ;;  %v1212_v18 = vpop.f32.mrf.mxu0 }
 0x199   : > { %v3129_v13 = vpop.eup %2438  ;;  %v1349_v7 = vadd.f32 %v1348_v12, %v1280_v10  ;;  %v1281_v19 = vpop.f32.mrf.mxu1  ;;  %v1213_v23 = vadd.f32 %v1212_v18, %v1144_v50  ;;  %v1152_v12 = vadd.f32 %v3115_v51, %v2958_v4  ;;  %v1154_v4 = vadd.f32 %v3127_v20, %v2967_v21 }
 0x19a   : > { %v1425_v22 = vmul.f32 %v3129_v13, %v3129_v13 }
 0x19b   : > { %2440 = vtanh.f32 %v1349_v7  ;;  %v1282_v37 = vadd.f32 %v1281_v19, %v1213_v23  ;;  %v2380_v19 = vld [vmem:[%s3396_s3 + $0x10] sm:$0xff] }
 0x19c   : > { %1452 = vadd.xlane.f32.xlu1 %v1425_v22  ;;  %1915 = vmatpush.bf16.msrb.mxu3 %v2380_v19 }
 0x19d   : > { %v1161_v22 = vpop.f32.mrf.mxu3 }
 0x1a0   : > { %v1350_v34 = vpop.f32.mrf.mxu2  ;;  %v1215_v46 = vpop.f32.mrf.mxu0 }
 0x1a1   : > { %v3144_v39 = vpop.eup %2440  ;;  %v1351_v43 = vadd.f32 %v1350_v34, %v1282_v37  ;;  %v1284_v47 = vpop.f32.mrf.mxu1  ;;  %v1216_v54 = vadd.f32 %v1215_v46, %v1147_v15  ;;  %v1157_v15 = vadd.f32 %v1156_v33, %v2971_v28 }
 0x1a2   : > { %v1426_v55 = vmul.f32 %v3144_v39, %v3144_v39 }
 0x1a3   : > { %2442 = vtanh.f32 %v1351_v43  ;;  %1254 = vmatmul.bf16.gmra.mxu0 %v479_v38  ;;  %v1285_v56 = vadd.f32 %v1284_v47, %v1216_v54  ;;  %v1159_v54 = vadd.f32 %v1158_v3, %v2980_v44  ;;  %v1162_v44 = vadd.f32 %v1161_v22, %v2984_v53 }
 0x1a4   : > { %1454 = vadd.xlane.f32.xlu2 %v1426_v55  ;;  %1323 = vmatmul.bf16.gmra.mxu1 %v480_v49 }
 0x1a5   : > { %2293 = vmatmul.msk.bf16.gmra.mxu2 %vm878_vm0, %v481_v52  ;;  %v1163_v37 = vpop.f32.mrf.mxu3 }
 0x1a6   : > { %v1164_v19 = vadd.f32 %v1163_v37, %v2993_v6 }
 0x1a8   : > { %v1353_v11 = vpop.f32.mrf.mxu2  ;;  %v1217_v60 = vpop.f32.mrf.mxu0 }
 0x1a9   : > { %v3151_v58 = vpop.eup %2442  ;;  %v1354_v57 = vadd.f32 %v1353_v11, %v1285_v56  ;;  %v1286_v62 = vpop.f32.mrf.mxu1  ;;  %v1218_v2 = vadd.f32 %v1217_v60, %v1149_v45  ;;  %v2379_v60 = vld [vmem:[%s3396_s3 + $0x8] sm:$0xff] }
 0x1aa   : > { %v1427_v0 = vmul.f32 %v3151_v58, %v3151_v58  ;;  %1916 = vmatpush.bf16.msrb.mxu3 %v2379_v60 }
 0x1ab   : > { %2444 = vtanh.f32 %v1354_v57  ;;  %v1287_v5 = vadd.f32 %v1286_v62, %v1218_v2 }
 0x1ac   : > { %1456 = vadd.xlane.f32.xlu2 %v1427_v0 }
 0x1ad   : > { %v1166_v57 = vpop.f32.mrf.mxu3 }
 0x1b0   : > { %v1355_v8 = vpop.f32.mrf.mxu2  ;;  %v1220_v7 = vpop.f32.mrf.mxu0 }
 0x1b1   : > { %v3157_v10 = vpop.eup %2444  ;;  %v1356_v50 = vadd.f32 %v1355_v8, %v1287_v5  ;;  %v1289_v61 = vpop.f32.mrf.mxu1  ;;  %v1221_v18 = vadd.f32 %v1220_v7, %v1152_v12 }
 0x1b2   : > { %v1428_v26 = vmul.f32 %v3157_v10, %v3157_v10 }
 0x1b3   : > { %2446 = vtanh.f32 %v1356_v50  ;;  %v1290_v23 = vadd.f32 %v1289_v61, %v1221_v18 }
 0x1b4   : > { %1458 = vadd.xlane.f32.xlu0 %v1428_v26 }
 0x1b5   : > { %v1168_v7 = vpop.f32.mrf.mxu3 }
 0x1b8   : > { %v1358_v24 = vpop.f32.mrf.mxu2  ;;  %v1222_v27 = vpop.f32.mrf.mxu0 }
 0x1b9   : > { %v3166_v25 = vpop.eup %2446  ;;  %v1359_v51 = vadd.f32 %v1358_v24, %v1290_v23  ;;  %v1291_v59 = vpop.f32.mrf.mxu1  ;;  %v1223_v31 = vadd.f32 %v1222_v27, %v1154_v4 }
 0x1ba   : > { %v1429_v35 = vmul.f32 %v3166_v25, %v3166_v25 }
 0x1bb   : > { %2448 = vtanh.f32 %v1359_v51  ;;  %v1292_v36 = vadd.f32 %v1291_v59, %v1223_v31  ;;  %v1167_v31 = vadd.f32 %v1166_v57, %v2997_v14 }
 0x1bc   : > { %1460 = vadd.xlane.f32.xlu1 %v1429_v35 }
 0x1bd   : > { %v1171_v51 = vpop.f32.mrf.mxu3 }
 0x1c0   : > { %v1360_v34 = vpop.f32.mrf.mxu2  ;;  %v1225_v46 = vpop.f32.mrf.mxu0 }
 0x1c1   : > { %v3172_v38 = vpop.eup %2448  ;;  %v1361_v43 = vadd.f32 %v1360_v34, %v1292_v36  ;;  %v1294_v47 = vpop.f32.mrf.mxu1  ;;  %v1226_v20 = vadd.f32 %v1225_v46, %v1157_v15 }
 0x1c2   : > { %v1430_v21 = vmul.f32 %v3172_v38, %v3172_v38 }
 0x1c3   : > { %2450 = vtanh.f32 %v1361_v43  ;;  %v1295_v49 = vadd.f32 %v1294_v47, %v1226_v20  ;;  %v1169_v20 = vadd.f32 %v1168_v7, %v3006_v32 }
 0x1c4   : > { %1462 = vadd.xlane.f32.xlu2 %v1430_v21 }
 0x1c5   : > { %v1173_v46 = vpop.f32.mrf.mxu3 }
 0x1c6   : > { %v1174_v7 = vadd.f32 %v1173_v46, %v3024_v63 }
 0x1c8   : > { %v1363_v52 = vpop.f32.mrf.mxu2  ;;  %v1227_v11 = vpop.f32.mrf.mxu0 }
 0x1c9   : > { %v3177_v55 = vpop.eup %2450  ;;  %v1364_v56 = vadd.f32 %v1363_v52, %v1295_v49  ;;  %v1296_v45 = vpop.f32.mrf.mxu1  ;;  %v1228_v33 = vadd.f32 %v1227_v11, %v1159_v54 }
 0x1ca   : > { %v1431_v28 = vmul.f32 %v3177_v55, %v3177_v55 }
 0x1cb   : > { %2452 = vtanh.f32 %v1364_v56  ;;  %v1297_v62 = vadd.f32 %v1296_v45, %v1228_v33 }
 0x1cc   : > { %1464 = vadd.xlane.f32.xlu0 %v1431_v28  ;;  %v1172_v28 = vadd.f32 %v1171_v51, %v3010_v41 }
 0x1d0   : > { %v1365_v0 = vpop.f32.mrf.mxu2  ;;  %v1230_v5 = vpop.f32.mrf.mxu0 }
 0x1d1   : > { %v3185_v2 = vpop.eup %2452  ;;  %v1366_v3 = vadd.f32 %v1365_v0, %v1297_v62  ;;  %v1299_v8 = vpop.f32.mrf.mxu1  ;;  %v1231_v50 = vadd.f32 %v1230_v5, %v1162_v44 }
 0x1d2   : > { %v1432_v12 = vmul.f32 %v3185_v2, %v3185_v2  ;;  %v1176_v0 = vpop.f32.mrf.mxu3 }
 0x1d3   : > { %2454 = vtanh.f32 %v1366_v3  ;;  %v1300_v61 = vadd.f32 %v1299_v8, %v1231_v50  ;;  %v2378_v3 = vld [vmem:[%s3396_s3] sm:$0xff]  ;;  %v1177_v63 = vadd.f32 %v1176_v0, %v3030_v9 }
 0x1d4   : > { %1466 = vadd.xlane.f32.xlu1 %v1432_v12  ;;  %1917 = vmatpush.bf16.msrb.mxu3 %v2378_v3 }
 0x1d8   : > { %v1368_v26 = vpop.f32.mrf.mxu2  ;;  %v1232_v24 = vpop.f32.mrf.mxu0 }
 0x1d9   : > { %v3190_v18 = vpop.eup %2454  ;;  %v1369_v23 = vadd.f32 %v1368_v26, %v1300_v61  ;;  %v1301_v4 = vpop.f32.mrf.mxu1  ;;  %v1233_v22 = vadd.f32 %v1232_v24, %v1164_v19 }
 0x1da   : > { %v1433_v53 = vmul.f32 %v3190_v18, %v3190_v18 }
 0x1db   : > { %2456 = vtanh.f32 %v1369_v23  ;;  %v1302_v27 = vadd.f32 %v1301_v4, %v1233_v22  ;;  %v1178_v4 = vpop.f32.mrf.mxu3 }
 0x1dc   : > { %1468 = vadd.xlane.f32.xlu2 %v1433_v53  ;;  %v1179_v9 = vadd.f32 %v1178_v4, %v3039_v29 }
 0x1e0   : > { %v1370_v59 = vpop.f32.mrf.mxu2  ;;  %v1235_v34 = vpop.f32.mrf.mxu0 }
 0x1e1   : > { %v3195_v35 = vpop.eup %2456  ;;  %v1371_v36 = vadd.f32 %v1370_v59, %v1302_v27  ;;  %v1304_v15 = vpop.f32.mrf.mxu1  ;;  %v1236_v37 = vadd.f32 %v1235_v34, %v1167_v31 }
 0x1e2   : > { %v1434_v6 = vmul.f32 %v3195_v35, %v3195_v35 }
 0x1e3   : > { %2458 = vtanh.f32 %v1371_v36  ;;  %v1305_v43 = vadd.f32 %v1304_v15, %v1236_v37 }
 0x1e4   : > { %1470 = vadd.xlane.f32.xlu0 %v1434_v6 }
 0x1e8   : > { %v1373_v47 = vpop.f32.mrf.mxu2  ;;  %v1237_v52 = vpop.f32.mrf.mxu0 }
 0x1e9   : > { %v3200_v21 = vpop.eup %2458  ;;  %v1374_v49 = vadd.f32 %v1373_v47, %v1305_v43  ;;  %v1306_v54 = vpop.f32.mrf.mxu1  ;;  %v1238_v56 = vadd.f32 %v1237_v52, %v1169_v20 }
 0x1ea   : > { %v1435_v14 = vmul.f32 %v3200_v21, %v3200_v21  ;;  %v1181_v20 = vpop.f32.mrf.mxu3 }
 0x1eb   : > { %2460 = vtanh.f32 %v1374_v49  ;;  %v1307_v11 = vadd.f32 %v1306_v54, %v1238_v56 }
 0x1ec   : > { %1472 = vadd.xlane.f32.xlu1 %v1435_v14 }
 0x1f0   : > { %v1375_v45 = vpop.f32.mrf.mxu2  ;;  %v1240_v60 = vpop.f32.mrf.mxu0 }
 0x1f1   : > { %v3205_v57 = vpop.eup %2460  ;;  %v1376_v33 = vadd.f32 %v1375_v45, %v1307_v11  ;;  %v1309_v62 = vpop.f32.mrf.mxu1  ;;  %v1241_v44 = vadd.f32 %v1240_v60, %v1172_v28 }
 0x1f2   : > { %v1436_v32 = vmul.f32 %v3205_v57, %v3205_v57 }
 0x1f3   : > { %2462 = vtanh.f32 %v1376_v33  ;;  %v1310_v5 = vadd.f32 %v1309_v62, %v1241_v44 }
 0x1f4   : > { %1474 = vadd.xlane.f32.xlu2 %v1436_v32 }
 0x1f7   : > { %v1447_v8 = vpop.xlane.xlu0 %1446 }
 0x1f8   : > { %v1494_v12 = vadd.f32 1e-12, %v1447_v8  ;;  %v1378_v50 = vpop.f32.mrf.mxu2  ;;  %v1242_v26 = vpop.f32.mrf.mxu0 }
 0x1f9   : > { %v3213_v41 = vpop.eup %2462  ;;  %v1379_v61 = vadd.f32 %v1378_v50, %v1310_v5  ;;  %v1311_v19 = vpop.f32.mrf.mxu1  ;;  %v1243_v24 = vadd.f32 %v1242_v26, %v1174_v7  ;;  %v1182_v26 = vadd.f32 %v1181_v20, %v3048_v42 }
 0x1fa   : > { %2464 = vrsqrt.f32 %v1494_v12  ;;  %v1437_v23 = vmul.f32 %v3213_v41, %v3213_v41  ;;  %vm1524_vm2 = vweird.f32 %v1494_v12 }
 0x1fb   : > { %2466 = vtanh.f32 %v1379_v61  ;;  %v1312_v53 = vadd.f32 %v1311_v19, %v1243_v24 }
 0x1fc   : > { %1476 = vadd.xlane.f32.xlu0 %v1437_v23 }
 0x1ff   : > { %v1449_v22 = vpop.xlane.xlu0 %1448 }
 0x200   : > { %v2465_v51 = vpop.eup %2464  ;;  %v1495_v27 = vadd.f32 1e-12, %v1449_v22  ;;  %v1380_v59 = vpop.f32.mrf.mxu2 }
 0x201   : > { %v3218_v31 = vpop.eup %2466  ;;  %v1519_v36 = vmul.f32 %v2465_v51, %v1494_v12  ;;  %v1381_v34 = vadd.f32 %v1380_v59, %v1312_v53  ;;  %v1245_v15 = vpop.f32.mrf.mxu0  ;;  %vm1525_vm1 = vweird.f32 %v2465_v51 }
 0x202   : > { %2468 = vrsqrt.f32 %v1495_v27  ;;  %v1314_v6 = vpop.f32.mrf.mxu1  ;;  %v1438_v37 = vmul.f32 %v3218_v31, %v3218_v31  ;;  %v1246_v46 = vadd.f32 %v1245_v15, %v1177_v63  ;;  %vm1526_vm3 = vmor %vm1524_vm2, %vm1525_vm1  ;;  %v1183_v12 = vpop.f32.mrf.mxu3  ;;  %vm1534_vm5 = vweird.f32 %v1495_v27 }
 0x203   : > { %v1520_v43 = vmul.f32 %v2465_v51, %v1519_v36  ;;  %2470 = vtanh.f32 %v1381_v34 }
 0x204   : > { %1478 = vadd.xlane.f32.xlu1 %v1438_v37  ;;  %v1315_v52 = vadd.f32 %v1314_v6, %v1246_v46 }
 0x205   : > { %v1521_v47 = vmul.f32 0.5, %v1520_v43 }
 0x207   : > { %v1522_v49 = vsub.f32 1.5, %v1521_v47  ;;  %v1451_v54 = vpop.xlane.xlu1 %1450 }
 0x208   : > { %v2469_v14 = vpop.eup %2468  ;;  %v3224_v56 = vadd.f32 1e-12, %v1451_v54  ;;  %v1383_v11 = vpop.f32.mrf.mxu2 }
 0x209   : > { %v3226_v45 = vpop.eup %2470  ;;  %v1523_v28 = vmul.f32 %v2465_v51, %v1522_v49  ;;  %v1529_v33 = vmul.f32 %v2469_v14, %v1495_v27  ;;  %v1384_v60 = vadd.f32 %v1383_v11, %v1315_v52  ;;  %v1247_v62 = vpop.f32.mrf.mxu0  ;;  %vm1535_vm4 = vweird.f32 %v2469_v14 }
 0x20a   : > { %2472 = vrsqrt.f32 %v3224_v56  ;;  %v1316_v32 = vpop.f32.mrf.mxu1  ;;  %v1439_v0 = vmul.f32 %v3226_v45, %v3226_v45  ;;  %v1248_v29 = vadd.f32 %v1247_v62, %v1179_v9  ;;  %vm1536_vm6 = vmor %vm1534_vm5, %vm1535_vm4  ;;  %v1184_v52 = vadd.f32 %v1183_v12, %v3059_v1 }
 0x20b   : > { %v1530_v44 = vmul.f32 %v2469_v14, %v1529_v33  ;;  %2474 = vtanh.f32 %v1384_v60  ;;  %v1527_v3 = vsel %vm1526_vm3, %v2465_v51, %v1523_v28  ;;  %vm1544_vm8 = vweird.f32 %v3224_v56 }
 0x20c   : > { %1480 = vadd.xlane.f32.xlu2 %v1439_v0  ;;  %v1317_v50 = vadd.f32 %v1316_v32, %v1248_v29  ;;  %v1758_v19 = vmul.f32 0.95, %v1527_v3 }
 0x20d   : > { %v1531_v5 = vmul.f32 0.5, %v1530_v44  ;;  %v1186_v44 = vpop.f32.mrf.mxu3 }
 0x20e   : > { %v1782_v6 = vmin.f32 %v1758_v19, 1.0 }
 0x20f   : > { %v1532_v8 = vsub.f32 1.5, %v1531_v5  ;;  %v1453_v7 = vpop.xlane.xlu1 %1452 }
 0x210   : > { %v2473_v61 = vpop.eup %2472  ;;  %v3232_v23 = vadd.f32 1e-12, %v1453_v7  ;;  %v1385_v24 = vpop.f32.mrf.mxu2  ;;  %v1806_v11 = vmul.f32 %v3094_v17, %v1782_v6 }
 0x211   : > { %v3234_v4 = vpop.eup %2474  ;;  %v1533_v53 = vmul.f32 %v2469_v14, %v1532_v8  ;;  %v1539_v22 = vmul.f32 %v2473_v61, %v3224_v56  ;;  %v1386_v51 = vadd.f32 %v1385_v24, %v1317_v50  ;;  %v1250_v59 = vpop.f32.mrf.mxu0  ;;  %vm1545_vm7 = vweird.f32 %v2473_v61 }
 0x212   : > { %2476 = vrsqrt.f32 %v3232_v23  ;;  %v1319_v63 = vpop.f32.mrf.mxu1  ;;  %v1440_v42 = vmul.f32 %v3234_v4, %v3234_v4  ;;  %v1251_v15 = vadd.f32 %v1250_v59, %v1182_v26  ;;  %vm1546_vm9 = vmor %vm1544_vm8, %vm1545_vm7  ;;  %v1187_v26 = vadd.f32 %v1186_v44, %v3065_v16 }
 0x213   : > { %v1537_v36 = vsel %vm1536_vm6, %v2469_v14, %v1533_v53  ;;  %v1540_v34 = vmul.f32 %v2473_v61, %v1539_v22  ;;  %2478 = vtanh.f32 %v1386_v51  ;;  %vm1554_vm11 = vweird.f32 %v3232_v23 }
 0x214   : > { %v1759_v37 = vmul.f32 0.95, %v1537_v36  ;;  %1482 = vadd.xlane.f32.xlu0 %v1440_v42  ;;  %v1320_v47 = vadd.f32 %v1319_v63, %v1251_v15 }
 0x215   : > { %v1541_v27 = vmul.f32 0.5, %v1540_v34 }
 0x216   : > { %v1783_v43 = vmin.f32 %v1759_v37, 1.0  ;;  %v1188_v37 = vpop.f32.mrf.mxu3 }
 0x217   : > { %v1542_v46 = vsub.f32 1.5, %v1541_v27  ;;  %v1455_v20 = vpop.xlane.xlu2 %1454 }
 0x218   : > { %v2477_v49 = vpop.eup %2476  ;;  %v3242_v54 = vadd.f32 1e-12, %v1455_v20  ;;  %v1388_v9 = vpop.f32.mrf.mxu2  ;;  %v1807_v14 = vmul.f32 %v3106_v30, %v1783_v43 }
 0x219   : > { %v3246_v28 = vpop.eup %2478  ;;  %v1543_v33 = vmul.f32 %v2473_v61, %v1542_v46  ;;  %v1549_v60 = vmul.f32 %v2477_v49, %v3232_v23  ;;  %v1389_v62 = vadd.f32 %v1388_v9, %v1320_v47  ;;  %v1252_v32 = vpop.f32.mrf.mxu0  ;;  %vm1555_vm10 = vweird.f32 %v2477_v49 }
 0x21a   : > { %2480 = vrsqrt.f32 %v3242_v54  ;;  %v1321_v1 = vpop.f32.mrf.mxu1  ;;  %v1441_v0 = vmul.f32 %v3246_v28, %v3246_v28  ;;  %v1253_v30 = vadd.f32 %v1252_v32, %v1184_v52  ;;  %v1830_v29 = vpack.c.bf16 %v1807_v14, %v1806_v11  ;;  %vm1556_vm12 = vmor %vm1554_vm11, %vm1555_vm10 }
 0x21b   : > { %v1550_v17 = vmul.f32 %v2477_v49, %v1549_v60  ;;  %2482 = vtanh.f32 %v1389_v62  ;;  %v1547_v3 = vsel %vm1546_vm9, %v2473_v61, %v1543_v33  ;;  %v1189_v52 = vadd.f32 %v1188_v37, %v3081_v40 }
 0x21c   : > { %1484 = vadd.xlane.f32.xlu1 %v1441_v0  ;;  %1918 = vmatmul.bf16.vlgmr.msrb.gmra.mxu3 %v1830_v29  ;;  %v1322_v50 = vadd.f32 %v1321_v1, %v1253_v30  ;;  %v1760_v12 = vmul.f32 0.95, %v1547_v3  ;;  %vm1564_vm14 = vweird.f32 %v3242_v54 }
 0x21d   : > { %v1551_v5 = vmul.f32 0.5, %v1550_v17 }
 0x21e   : > { %v1784_v6 = vmin.f32 %v1760_v12, 1.0 }
 0x21f   : > { %v1552_v8 = vsub.f32 1.5, %v1551_v5  ;;  %v1457_v56 = vpop.xlane.xlu2 %1456 }
 0x220   : > { %v2481_v7 = vpop.eup %2480  ;;  %v3254_v19 = vadd.f32 1e-12, %v1457_v56  ;;  %v1390_v24 = vpop.f32.mrf.mxu2 }
 0x221   : > { %v3256_v53 = vpop.eup %2482  ;;  %v1553_v22 = vmul.f32 %v2477_v49, %v1552_v8  ;;  %v1559_v61 = vmul.f32 %v2481_v7, %v3242_v54  ;;  %v1391_v51 = vadd.f32 %v1390_v24, %v1322_v50  ;;  %v1255_v59 = vpop.f32.mrf.mxu0  ;;  %vm1565_vm13 = vweird.f32 %v2481_v7 }
 0x222   : > { %2484 = vrsqrt.f32 %v3254_v19  ;;  %v1442_v63 = vmul.f32 %v3256_v53, %v3256_v53  ;;  %v1256_v36 = vadd.f32 %v1255_v59, %v1187_v26  ;;  %v1324_v34 = vpop.f32.mrf.mxu1  ;;  %vm1566_vm15 = vmor %vm1564_vm14, %vm1565_vm13  ;;  %vm1574_vm1 = vweird.f32 %v3254_v19 }
 0x223   : > { %v1557_v16 = vsel %vm1556_vm12, %v2477_v49, %v1553_v22  ;;  %v1560_v42 = vmul.f32 %v2481_v7, %v1559_v61  ;;  %2486 = vtanh.f32 %v1391_v51  ;;  %v1808_v49 = vmul.f32 %v3120_v48, %v1784_v6 }
 0x224   : > { %1486 = vadd.xlane.f32.xlu2 %v1442_v63  ;;  %v1761_v15 = vmul.f32 0.95, %v1557_v16  ;;  %v1325_v46 = vadd.f32 %v1324_v34, %v1256_v36 }
 0x225   : > { %v1561_v23 = vmul.f32 0.5, %v1560_v42 }
 0x226   : > { %v1785_v27 = vmin.f32 %v1761_v15, 1.0 }
 0x227   : > { %v1562_v43 = vsub.f32 1.5, %v1561_v23  ;;  %v1459_v47 = vpop.xlane.xlu0 %1458 }
 0x228   : > { %v2485_v20 = vpop.eup %2484  ;;  %v1500_v9 = vadd.f32 1e-12, %v1459_v47  ;;  %v1393_v11 = vpop.f32.mrf.mxu2  ;;  %v1809_v14 = vmul.f32 %v3129_v13, %v1785_v27 }
 0x229   : > { %v3266_v33 = vpop.eup %2486  ;;  %v1563_v60 = vmul.f32 %v2481_v7, %v1562_v43  ;;  %v1569_v62 = vmul.f32 %v2485_v20, %v3254_v19  ;;  %v1394_v32 = vadd.f32 %v1393_v11, %v1325_v46  ;;  %v1257_v1 = vpop.f32.mrf.mxu0  ;;  %vm1575_vm0 = vweird.f32 %v2485_v20 }
 0x22a   : > { %2488 = vrsqrt.f32 %v1500_v9  ;;  %v1443_v40 = vmul.f32 %v3266_v33, %v3266_v33  ;;  %v1258_v44 = vadd.f32 %v1257_v1, %v1189_v52  ;;  %v1831_v48 = vpack.c.bf16 %v1809_v14, %v1808_v49  ;;  %v1326_v30 = vpop.f32.mrf.mxu1  ;;  %vm1576_vm2 = vmor %vm1574_vm1, %vm1575_vm0 }
 0x22b   : > { %v1570_v0 = vmul.f32 %v2485_v20, %v1569_v62  ;;  %2490 = vtanh.f32 %v1394_v32  ;;  %v1567_v13 = vsel %vm1566_vm15, %v2481_v7, %v1563_v60  ;;  %vm1584_vm4 = vweird.f32 %v1500_v9 }
 0x22c   : > { %1488 = vadd.xlane.f32.xlu0 %v1443_v40  ;;  %1923 = vmatmul.bf16.gmra.mxu3 %v1831_v48  ;;  %v1327_v3 = vadd.f32 %v1326_v30, %v1258_v44  ;;  %v1762_v56 = vmul.f32 0.95, %v1567_v13 }
 0x22d   : > { %v1571_v17 = vmul.f32 0.5, %v1570_v0 }
 0x22e   : > { %v1786_v63 = vmin.f32 %v1762_v56, 1.0 }
 0x22f   : > { %v1572_v29 = vsub.f32 1.5, %v1571_v17  ;;  %v1461_v5 = vpop.xlane.xlu1 %1460 }
 0x230   : > { %v2489_v8 = vpop.eup %2488  ;;  %v1501_v54 = vadd.f32 1e-12, %v1461_v5  ;;  %v1395_v50 = vpop.f32.mrf.mxu2  ;;  %v1810_v19 = vmul.f32 %v3144_v39, %v1786_v63 }
 0x231   : > { %v3272_v26 = vpop.eup %2490  ;;  %v1573_v24 = vmul.f32 %v2485_v20, %v1572_v29  ;;  %v1579_v12 = vmul.f32 %v2489_v8, %v1500_v9  ;;  %v1396_v22 = vadd.f32 %v1395_v50, %v1327_v3  ;;  %vm1585_vm3 = vweird.f32 %v2489_v8 }
 0x232   : > { %2492 = vrsqrt.f32 %v1501_v54  ;;  %v1444_v7 = vmul.f32 %v3272_v26, %v3272_v26  ;;  %vm1586_vm5 = vmor %vm1584_vm4, %vm1585_vm3  ;;  %vm1594_vm7 = vweird.f32 %v1501_v54 }
 0x233   : > { %v1577_v61 = vsel %vm1576_vm2, %v2485_v20, %v1573_v24  ;;  %v1580_v51 = vmul.f32 %v2489_v8, %v1579_v12  ;;  %2494 = vtanh.f32 %v1396_v22 }
 0x234   : > { %1490 = vadd.xlane.f32.xlu1 %v1444_v7  ;;  %v1763_v59 = vmul.f32 0.95, %v1577_v61 }
 0x235   : > { %v1581_v16 = vmul.f32 0.5, %v1580_v51 }
 0x236   : > { %v1787_v42 = vmin.f32 %v1763_v59, 1.0 }
 0x237   : > { %v1582_v36 = vsub.f32 1.5, %v1581_v16  ;;  %v1463_v34 = vpop.xlane.xlu2 %1462 }
 0x238   : > { %v2493_v15 = vpop.eup %2492  ;;  %v1502_v6 = vadd.f32 1e-12, %v1463_v34  ;;  %v1811_v37 = vmul.f32 %v3151_v58, %v1787_v42 }
 0x239   : > { %v3279_v23 = vpop.eup %2494  ;;  %v1583_v27 = vmul.f32 %v2489_v8, %v1582_v36  ;;  %v1589_v43 = vmul.f32 %v2493_v15, %v1501_v54  ;;  %vm1595_vm6 = vweird.f32 %v2493_v15 }
 0x23a   : > { %2496 = vrsqrt.f32 %v1502_v6  ;;  %v1445_v46 = vmul.f32 %v3279_v23, %v3279_v23  ;;  %v1832_v47 = vpack.c.bf16 %v1811_v37, %v1810_v19  ;;  %vm1596_vm8 = vmor %vm1594_vm7, %vm1595_vm6  ;;  %vm1604_vm10 = vweird.f32 %v1502_v6 }
 0x23b   : > { %v1590_v20 = vmul.f32 %v2493_v15, %v1589_v43  ;;  %v1587_v52 = vsel %vm1586_vm5, %v2489_v8, %v1583_v27 }
 0x23c   : > { %1492 = vadd.xlane.f32.xlu2 %v1445_v46  ;;  %1928 = vmatmul.bf16.gmra.mxu3 %v1832_v47  ;;  %v1764_v60 = vmul.f32 0.95, %v1587_v52 }
 0x23d   : > { %v1591_v11 = vmul.f32 0.5, %v1590_v20 }
 0x23e   : > { %v1788_v0 = vmin.f32 %v1764_v60, 1.0 }
 0x23f   : > { %v1592_v39 = vsub.f32 1.5, %v1591_v11  ;;  %v1465_v58 = vpop.xlane.xlu0 %1464 }
 0x240   : > { %v2497_v49 = vpop.eup %2496  ;;  %v1503_v14 = vadd.f32 1e-12, %v1465_v58  ;;  %v1812_v3 = vmul.f32 %v3157_v10, %v1788_v0 }
 0x241   : > { %v1593_v62 = vmul.f32 %v2493_v15, %v1592_v39  ;;  %v1599_v32 = vmul.f32 %v2497_v49, %v1502_v6  ;;  %vm1605_vm9 = vweird.f32 %v2497_v49 }
 0x242   : > { %2498 = vrsqrt.f32 %v1503_v14  ;;  %vm1606_vm11 = vmor %vm1604_vm10, %vm1605_vm9  ;;  %vm1614_vm13 = vweird.f32 %v1503_v14 }
 0x243   : > { %v1597_v1 = vsel %vm1596_vm8, %v2493_v15, %v1593_v62  ;;  %v1600_v40 = vmul.f32 %v2497_v49, %v1599_v32 }
 0x244   : > { %v1765_v9 = vmul.f32 0.95, %v1597_v1 }
 0x245   : > { %v1601_v44 = vmul.f32 0.5, %v1600_v40 }
 0x246   : > { %v1789_v48 = vmin.f32 %v1765_v9, 1.0 }
 0x247   : > { %v1602_v13 = vsub.f32 1.5, %v1601_v44  ;;  %v1467_v17 = vpop.xlane.xlu1 %1466 }
 0x248   : > { %v2499_v30 = vpop.eup %2498  ;;  %v1504_v29 = vadd.f32 1e-12, %v1467_v17  ;;  %v1813_v5 = vmul.f32 %v3166_v25, %v1789_v48 }
 0x249   : > { %v1603_v8 = vmul.f32 %v2497_v49, %v1602_v13  ;;  %v1609_v54 = vmul.f32 %v2499_v30, %v1503_v14  ;;  %vm1615_vm12 = vweird.f32 %v2499_v30 }
 0x24a   : > { %2500 = vrsqrt.f32 %v1504_v29  ;;  %v1833_v50 = vpack.c.bf16 %v1813_v5, %v1812_v3  ;;  %vm1616_vm14 = vmor %vm1614_vm13, %vm1615_vm12  ;;  %vm1624_vm0 = vweird.f32 %v1504_v29 }
 0x24b   : > { %v1610_v56 = vmul.f32 %v2499_v30, %v1609_v54  ;;  %v1607_v24 = vsel %vm1606_vm11, %v2497_v49, %v1603_v8 }
 0x24c   : > { %1933 = vmatmul.bf16.gmra.mxu3 %v1833_v50  ;;  %v1766_v59 = vmul.f32 0.95, %v1607_v24 }
 0x24d   : > { %v1611_v12 = vmul.f32 0.5, %v1610_v56 }
 0x24e   : > { %v1790_v36 = vmin.f32 %v1766_v59, 1.0 }
 0x24f   : > { %v1612_v22 = vsub.f32 1.5, %v1611_v12  ;;  %v1469_v7 = vpop.xlane.xlu2 %1468 }
 0x250   : > { %v2501_v61 = vpop.eup %2500  ;;  %v1505_v51 = vadd.f32 1e-12, %v1469_v7  ;;  %v1814_v43 = vmul.f32 %v3172_v38, %v1790_v36 }
 0x251   : > { %v1613_v10 = vmul.f32 %v2499_v30, %v1612_v22  ;;  %v1619_v25 = vmul.f32 %v2501_v61, %v1504_v29  ;;  %vm1625_vm15 = vweird.f32 %v2501_v61 }
 0x252   : > { %2502 = vrsqrt.f32 %v1505_v51  ;;  %vm1626_vm1 = vmor %vm1624_vm0, %vm1625_vm15  ;;  %vm1634_vm3 = vweird.f32 %v1505_v51 }
 0x253   : > { %v1617_v63 = vsel %vm1616_vm14, %v2499_v30, %v1613_v10  ;;  %v1620_v16 = vmul.f32 %v2501_v61, %v1619_v25 }
 0x254   : > { %v1767_v42 = vmul.f32 0.95, %v1617_v63 }
 0x255   : > { %v1621_v34 = vmul.f32 0.5, %v1620_v16 }
 0x256   : > { %v1791_v15 = vmin.f32 %v1767_v42, 1.0 }
 0x257   : > { %v1622_v6 = vsub.f32 1.5, %v1621_v34  ;;  %v1471_v19 = vpop.xlane.xlu0 %1470 }
 0x258   : > { %v2503_v37 = vpop.eup %2502  ;;  %v1506_v27 = vadd.f32 1e-12, %v1471_v19  ;;  %v1815_v46 = vmul.f32 %v3177_v55, %v1791_v15 }
 0x259   : > { %v1623_v47 = vmul.f32 %v2501_v61, %v1622_v6  ;;  %v1629_v20 = vmul.f32 %v2503_v37, %v1505_v51  ;;  %vm1635_vm2 = vweird.f32 %v2503_v37 }
 0x25a   : > { %2504 = vrsqrt.f32 %v1506_v27  ;;  %v1834_v52 = vpack.c.bf16 %v1815_v46, %v1814_v43  ;;  %vm1636_vm4 = vmor %vm1634_vm3, %vm1635_vm2  ;;  %vm1644_vm6 = vweird.f32 %v1506_v27 }
 0x25b   : > { %v1630_v11 = vmul.f32 %v2503_v37, %v1629_v20  ;;  %v1627_v39 = vsel %vm1626_vm1, %v2501_v61, %v1623_v47 }
 0x25c   : > { %1938 = vmatmul.bf16.gmra.mxu3 %v1834_v52  ;;  %v1768_v32 = vmul.f32 0.95, %v1627_v39 }
 0x25d   : > { %v1631_v58 = vmul.f32 0.5, %v1630_v11 }
 0x25e   : > { %v1792_v0 = vmin.f32 %v1768_v32, 1.0 }
 0x25f   : > { %v1632_v49 = vsub.f32 1.5, %v1631_v58  ;;  %v1473_v14 = vpop.xlane.xlu1 %1472 }
 0x260   : > { %v2505_v60 = vpop.eup %2504  ;;  %v1507_v62 = vadd.f32 1e-12, %v1473_v14  ;;  %v1816_v3 = vmul.f32 %v3185_v2, %v1792_v0 }
 0x261   : > { %v1633_v38 = vmul.f32 %v2503_v37, %v1632_v49  ;;  %v1639_v55 = vmul.f32 %v2505_v60, %v1506_v27  ;;  %vm1645_vm5 = vweird.f32 %v2505_v60 }
 0x262   : > { %2506 = vrsqrt.f32 %v1507_v62  ;;  %vm1646_vm7 = vmor %vm1644_vm6, %vm1645_vm5  ;;  %vm1654_vm9 = vweird.f32 %v1507_v62 }
 0x263   : > { %v1637_v1 = vsel %vm1636_vm4, %v2503_v37, %v1633_v38  ;;  %v1640_v40 = vmul.f32 %v2505_v60, %v1639_v55 }
 0x264   : > { %v1769_v9 = vmul.f32 0.95, %v1637_v1 }
 0x265   : > { %v1641_v44 = vmul.f32 0.5, %v1640_v40 }
 0x266   : > { %v1793_v48 = vmin.f32 %v1769_v9, 1.0 }
 0x267   : > { %v1642_v13 = vsub.f32 1.5, %v1641_v44  ;;  %v1475_v17 = vpop.xlane.xlu2 %1474 }
 0x268   : > { %v2507_v30 = vpop.eup %2506  ;;  %v1508_v29 = vadd.f32 1e-12, %v1475_v17  ;;  %v1817_v5 = vmul.f32 %v3190_v18, %v1793_v48 }
 0x269   : > { %v1643_v8 = vmul.f32 %v2505_v60, %v1642_v13  ;;  %v1649_v54 = vmul.f32 %v2507_v30, %v1507_v62  ;;  %vm1655_vm8 = vweird.f32 %v2507_v30 }
 0x26a   : > { %2508 = vrsqrt.f32 %v1508_v29  ;;  %v1835_v50 = vpack.c.bf16 %v1817_v5, %v1816_v3  ;;  %vm1656_vm10 = vmor %vm1654_vm9, %vm1655_vm8  ;;  %vm1664_vm12 = vweird.f32 %v1508_v29 }
 0x26b   : > { %v1650_v56 = vmul.f32 %v2507_v30, %v1649_v54  ;;  %v1647_v24 = vsel %vm1646_vm7, %v2505_v60, %v1643_v8 }
 0x26c   : > { %1943 = vmatmul.bf16.gmra.mxu3 %v1835_v50  ;;  %v1770_v59 = vmul.f32 0.95, %v1647_v24 }
 0x26d   : > { %v1651_v12 = vmul.f32 0.5, %v1650_v56 }
 0x26e   : > { %v1794_v16 = vmin.f32 %v1770_v59, 1.0 }
 0x26f   : > { %v1652_v22 = vsub.f32 1.5, %v1651_v12  ;;  %v1477_v7 = vpop.xlane.xlu0 %1476 }
 0x270   : > { %v2509_v61 = vpop.eup %2508  ;;  %v1509_v51 = vadd.f32 1e-12, %v1477_v7  ;;  %v1818_v37 = vmul.f32 %v3195_v35, %v1794_v16 }
 0x271   : > { %v1653_v2 = vmul.f32 %v2507_v30, %v1652_v22  ;;  %v1659_v18 = vmul.f32 %v2509_v61, %v1508_v29  ;;  %vm1665_vm11 = vweird.f32 %v2509_v61 }
 0x272   : > { %2510 = vrsqrt.f32 %v1509_v51  ;;  %vm1666_vm13 = vmor %vm1664_vm12, %vm1665_vm11  ;;  %vm1674_vm15 = vweird.f32 %v1509_v51 }
 0x273   : > { %v1657_v10 = vsel %vm1656_vm10, %v2507_v30, %v1653_v2  ;;  %v1660_v25 = vmul.f32 %v2509_v61, %v1659_v18 }
 0x274   : > { %v1771_v63 = vmul.f32 0.95, %v1657_v10 }
 0x275   : > { %v1661_v42 = vmul.f32 0.5, %v1660_v25 }
 0x276   : > { %v1795_v36 = vmin.f32 %v1771_v63, 1.0 }
 0x277   : > { %v1662_v34 = vsub.f32 1.5, %v1661_v42  ;;  %v1479_v15 = vpop.xlane.xlu1 %1478 }
 0x278   : > { %v2511_v6 = vpop.eup %2510  ;;  %v1510_v19 = vadd.f32 1e-12, %v1479_v15  ;;  %v1819_v27 = vmul.f32 %v3200_v21, %v1795_v36 }
 0x279   : > { %v1663_v43 = vmul.f32 %v2509_v61, %v1662_v34  ;;  %v1669_v46 = vmul.f32 %v2511_v6, %v1509_v51  ;;  %vm1675_vm14 = vweird.f32 %v2511_v6 }
 0x27a   : > { %2512 = vrsqrt.f32 %v1510_v19  ;;  %v1836_v47 = vpack.c.bf16 %v1819_v27, %v1818_v37  ;;  %vm1676_vm0 = vmor %vm1674_vm15, %vm1675_vm14  ;;  %vm1684_vm2 = vweird.f32 %v1510_v19 }
 0x27b   : > { %v1670_v20 = vmul.f32 %v2511_v6, %v1669_v46  ;;  %v1667_v52 = vsel %vm1666_vm13, %v2509_v61, %v1663_v43 }
 0x27c   : > { %1948 = vmatmul.bf16.gmra.mxu3 %v1836_v47  ;;  %v1772_v60 = vmul.f32 0.95, %v1667_v52 }
 0x27d   : > { %v1671_v11 = vmul.f32 0.5, %v1670_v20 }
 0x27e   : > { %v1796_v55 = vmin.f32 %v1772_v60, 1.0 }
 0x27f   : > { %v1672_v39 = vsub.f32 1.5, %v1671_v11  ;;  %v1481_v58 = vpop.xlane.xlu2 %1480 }
 0x280   : > { %v2513_v49 = vpop.eup %2512  ;;  %v1511_v14 = vadd.f32 1e-12, %v1481_v58  ;;  %v1820_v13 = vmul.f32 %v3205_v57, %v1796_v55 }
 0x281   : > { %v1673_v35 = vmul.f32 %v2511_v6, %v1672_v39  ;;  %v1679_v21 = vmul.f32 %v2513_v49, %v1510_v19  ;;  %vm1685_vm1 = vweird.f32 %v2513_v49 }
 0x282   : > { %2514 = vrsqrt.f32 %v1511_v14  ;;  %vm1686_vm3 = vmor %vm1684_vm2, %vm1685_vm1  ;;  %vm1694_vm5 = vweird.f32 %v1511_v14 }
 0x283   : > { %v1677_v62 = vsel %vm1676_vm0, %v2511_v6, %v1673_v35  ;;  %v1680_v32 = vmul.f32 %v2513_v49, %v1679_v21 }
 0x284   : > { %v1773_v38 = vmul.f32 0.95, %v1677_v62 }
 0x285   : > { %v1681_v1 = vmul.f32 0.5, %v1680_v32 }
 0x286   : > { %v1797_v40 = vmin.f32 %v1773_v38, 1.0 }
 0x287   : > { %v1682_v9 = vsub.f32 1.5, %v1681_v1  ;;  %v1483_v0 = vpop.xlane.xlu0 %1482 }
 0x288   : > { %v2515_v44 = vpop.eup %2514  ;;  %v1512_v48 = vadd.f32 1e-12, %v1483_v0  ;;  %v1821_v17 = vmul.f32 %v3213_v41, %v1797_v40 }
 0x289   : > { %v1683_v30 = vmul.f32 %v2513_v49, %v1682_v9  ;;  %v1689_v29 = vmul.f32 %v2515_v44, %v1511_v14  ;;  %vm1695_vm4 = vweird.f32 %v2515_v44 }
 0x28a   : > { %2516 = vrsqrt.f32 %v1512_v48  ;;  %v1837_v3 = vpack.c.bf16 %v1821_v17, %v1820_v13  ;;  %vm1696_vm6 = vmor %vm1694_vm5, %vm1695_vm4  ;;  %vm1704_vm8 = vweird.f32 %v1512_v48 }
 0x28b   : > { %v1690_v5 = vmul.f32 %v2515_v44, %v1689_v29  ;;  %v1687_v8 = vsel %vm1686_vm3, %v2513_v49, %v1683_v30 }
 0x28c   : > { %1953 = vmatmul.bf16.gmra.mxu3 %v1837_v3  ;;  %v1774_v22 = vmul.f32 0.95, %v1687_v8 }
 0x28d   : > { %v1691_v54 = vmul.f32 0.5, %v1690_v5 }
 0x28e   : > { %v1798_v59 = vmin.f32 %v1774_v22, 1.0 }
 0x28f   : > { %v1692_v50 = vsub.f32 1.5, %v1691_v54  ;;  %v1485_v56 = vpop.xlane.xlu1 %1484 }
 0x290   : > { %v2517_v24 = vpop.eup %2516  ;;  %v1513_v12 = vadd.f32 1e-12, %v1485_v56  ;;  %v1822_v42 = vmul.f32 %v3218_v31, %v1798_v59  ;;  %v3301_v31 = vld [vmem:[%s3397_s4] ss:$0 sm:$0xff] }
 0x291   : > { %v1693_v57 = vmul.f32 %v2515_v44, %v1692_v50  ;;  %v1699_v41 = vmul.f32 %v2517_v24, %v1512_v48  ;;  %vm1705_vm7 = vweird.f32 %v2517_v24 }
 0x292   : > { %2518 = vrsqrt.f32 %v1513_v12  ;;  %vm1706_vm9 = vmor %vm1704_vm8, %vm1705_vm7  ;;  %vm1714_vm11 = vweird.f32 %v1513_v12 }
 0x293   : > { %v1697_v7 = vsel %vm1696_vm6, %v2515_v44, %v1693_v57  ;;  %v1700_v61 = vmul.f32 %v2517_v24, %v1699_v41 }
 0x294   : > { %v1775_v51 = vmul.f32 0.95, %v1697_v7 }
 0x295   : > { %v1701_v2 = vmul.f32 0.5, %v1700_v61 }
 0x296   : > { %v1799_v18 = vmin.f32 %v1775_v51, 1.0 }
 0x297   : > { %v1702_v10 = vsub.f32 1.5, %v1701_v2  ;;  %v1487_v25 = vpop.xlane.xlu2 %1486 }
 0x298   : > { %v2519_v63 = vpop.eup %2518  ;;  %v1514_v16 = vadd.f32 1e-12, %v1487_v25  ;;  %v1823_v36 = vmul.f32 %v3226_v45, %v1799_v18 }
 0x299   : > { %v1703_v34 = vmul.f32 %v2517_v24, %v1702_v10  ;;  %v1709_v15 = vmul.f32 %v2519_v63, %v1513_v12  ;;  %vm1715_vm10 = vweird.f32 %v2519_v63 }
 0x29a   : > { %2520 = vrsqrt.f32 %v1514_v16  ;;  %v1838_v6 = vpack.c.bf16 %v1823_v36, %v1822_v42  ;;  %vm1716_vm12 = vmor %vm1714_vm11, %vm1715_vm10  ;;  %vm1724_vm14 = vweird.f32 %v1514_v16 }
 0x29b   : > { %v1710_v19 = vmul.f32 %v2519_v63, %v1709_v15  ;;  %v1707_v37 = vsel %vm1706_vm9, %v2517_v24, %v1703_v34 }
 0x29c   : > { %1958 = vmatmul.bf16.gmra.mxu3 %v1838_v6  ;;  %v1776_v52 = vmul.f32 0.95, %v1707_v37 }
 0x29d   : > { %v1711_v27 = vmul.f32 0.5, %v1710_v19 }
 0x29e   : > { %v1800_v35 = vmin.f32 %v1776_v52, 1.0 }
 0x29f   : > { %v1712_v45 = vsub.f32 1.5, %v1711_v27  ;;  %v1489_v43 = vpop.xlane.xlu0 %1488  ;;  %v1919_v47 = vpop.f32.mrf.mxu3 }
 0x2a0   : > { %v2521_v46 = vpop.eup %2520  ;;  %v1515_v20 = vadd.f32 1e-12, %v1489_v43  ;;  %v1920_v58 = vadd.f32 %v3301_v31, %v1919_v47  ;;  %v1824_v9 = vmul.f32 %v3234_v4, %v1800_v35 }
 0x2a1   : > { %v1713_v11 = vmul.f32 %v2519_v63, %v1712_v45  ;;  %v1719_v39 = vmul.f32 %v2521_v46, %v1514_v16  ;;  %vm1725_vm13 = vweird.f32 %v2521_v46 }
 0x2a2   : > { %2522 = vrsqrt.f32 %v1515_v20  ;;  %1979 = vst [vmem:[%s3304_s6] sm:$0xff] %v1920_v58  ;;  %vm1726_vm15 = vmor %vm1724_vm14, %vm1725_vm13  ;;  %vm1734_vm1 = vweird.f32 %v1515_v20 }
 0x2a3   : > { %v1717_v49 = vsel %vm1716_vm12, %v2519_v63, %v1713_v11  ;;  %v1720_v14 = vmul.f32 %v2521_v46, %v1719_v39 }
 0x2a4   : > { %v1777_v60 = vmul.f32 0.95, %v1717_v49 }
 0x2a5   : > { %v1721_v21 = vmul.f32 0.5, %v1720_v14 }
 0x2a6   : > { %v1801_v62 = vmin.f32 %v1777_v60, 1.0 }
 0x2a7   : > { %v1722_v32 = vsub.f32 1.5, %v1721_v21  ;;  %v1491_v38 = vpop.xlane.xlu1 %1490  ;;  %v1921_v40 = vpop.f32.mrf.mxu3 }
 0x2a8   : > { %v2523_v55 = vpop.eup %2522  ;;  %v1516_v1 = vadd.f32 1e-12, %v1491_v38  ;;  %v1825_v0 = vmul.f32 %v3246_v28, %v1801_v62  ;;  %v1922_v13 = vadd.f32 %v3301_v31, %v1921_v40 }
 0x2a9   : > { %v1723_v44 = vmul.f32 %v2521_v46, %v1722_v32  ;;  %v1729_v48 = vmul.f32 %v2523_v55, %v1515_v20  ;;  %vm1735_vm0 = vweird.f32 %v2523_v55 }
 0x2aa   : > { %2524 = vrsqrt.f32 %v1516_v1  ;;  %v1839_v17 = vpack.c.bf16 %v1825_v0, %v1824_v9  ;;  %1980 = vst [vmem:[%s3304_s6 + $0x8] sm:$0xff] %v1922_v13  ;;  %vm1736_vm2 = vmor %vm1734_vm1, %vm1735_vm0  ;;  %vm1744_vm4 = vweird.f32 %v1516_v1 }
 0x2ab   : > { %v1730_v30 = vmul.f32 %v2523_v55, %v1729_v48  ;;  %v1727_v29 = vsel %vm1726_vm15, %v2521_v46, %v1723_v44 }
 0x2ac   : > { %1963 = vmatmul.bf16.gmra.mxu3 %v1839_v17  ;;  %v1778_v50 = vmul.f32 0.95, %v1727_v29 }
 0x2ad   : > { %v1731_v3 = vmul.f32 0.5, %v1730_v30 }
 0x2ae   : > { %v1802_v7 = vmin.f32 %v1778_v50, 1.0 }
 0x2af   : > { %v1732_v5 = vsub.f32 1.5, %v1731_v3  ;;  %v1493_v4 = vpop.xlane.xlu2 %1492  ;;  %v1924_v54 = vpop.f32.mrf.mxu3 }
 0x2b0   : > { %v2525_v8 = vpop.eup %2524  ;;  %v1517_v28 = vadd.f32 1e-12, %v1493_v4  ;;  %v1925_v12 = vadd.f32 %v3301_v31, %v1924_v54  ;;  %v1826_v10 = vmul.f32 %v3256_v53, %v1802_v7 }
 0x2b1   : > { %v1733_v56 = vmul.f32 %v2523_v55, %v1732_v5  ;;  %v1739_v24 = vmul.f32 %v2525_v8, %v1516_v1  ;;  %vm1745_vm3 = vweird.f32 %v2525_v8 }
 0x2b2   : > { %2526 = vrsqrt.f32 %v1517_v28  ;;  %1981 = vst [vmem:[%s3304_s6 + $0x10] sm:$0xff] %v1925_v12  ;;  %vm1746_vm5 = vmor %vm1744_vm4, %vm1745_vm3  ;;  %vm1754_vm7 = vweird.f32 %v1517_v28 }
 0x2b3   : > { %v1737_v22 = vsel %vm1736_vm2, %v2523_v55, %v1733_v56  ;;  %v1740_v57 = vmul.f32 %v2525_v8, %v1739_v24 }
 0x2b4   : > { %v1779_v41 = vmul.f32 0.95, %v1737_v22 }
 0x2b5   : > { %v1741_v61 = vmul.f32 0.5, %v1740_v57 }
 0x2b6   : > { %v1803_v51 = vmin.f32 %v1779_v41, 1.0 }
 0x2b7   : > { %v1742_v59 = vsub.f32 1.5, %v1741_v61  ;;  %v1926_v18 = vpop.f32.mrf.mxu3 }
 0x2b8   : > { %v2527_v2 = vpop.eup %2526  ;;  %v1827_v25 = vmul.f32 %v3266_v33, %v1803_v51  ;;  %v1927_v42 = vadd.f32 %v3301_v31, %v1926_v18 }
 0x2b9   : > { %v1743_v63 = vmul.f32 %v2525_v8, %v1742_v59  ;;  %v1749_v16 = vmul.f32 %v2527_v2, %v1517_v28  ;;  %vm1755_vm6 = vweird.f32 %v2527_v2 }
 0x2ba   : > { %v1840_v36 = vpack.c.bf16 %v1827_v25, %v1826_v10  ;;  %1982 = vst [vmem:[%s3304_s6 + $0x18] sm:$0xff] %v1927_v42  ;;  %vm1756_vm8 = vmor %vm1754_vm7, %vm1755_vm6 }
 0x2bb   : > { %v1750_v34 = vmul.f32 %v2527_v2, %v1749_v16  ;;  %v1747_v15 = vsel %vm1746_vm5, %v2525_v8, %v1743_v63 }
 0x2bc   : > { %1968 = vmatmul.bf16.gmra.mxu3 %v1840_v36  ;;  %v1780_v37 = vmul.f32 0.95, %v1747_v15 }
 0x2bd   : > { %v1751_v6 = vmul.f32 0.5, %v1750_v34 }
 0x2be   : > { %v1804_v46 = vmin.f32 %v1780_v37, 1.0 }
 0x2bf   : > { %v1752_v19 = vsub.f32 1.5, %v1751_v6  ;;  %v1929_v53 = vpop.f32.mrf.mxu3 }
 0x2c0   : > { %v1930_v27 = vadd.f32 %v3301_v31, %v1929_v53  ;;  %v1828_v52 = vmul.f32 %v3272_v26, %v1804_v46 }
 0x2c1   : > { %v1753_v33 = vmul.f32 %v2527_v2, %v1752_v19 }
 0x2c2   : > { %1983 = vst [vmem:[%s3304_s6 + $0x20] sm:$0xff] %v1930_v27 }
 0x2c3   : > { %v1757_v45 = vsel %vm1756_vm8, %v2527_v2, %v1753_v33 }
 0x2c4   : > { %v1781_v43 = vmul.f32 0.95, %v1757_v45 }
 0x2c6   : > { %v1805_v47 = vmin.f32 %v1781_v43, 1.0 }
 0x2c7   : > { %v1931_v20 = vpop.f32.mrf.mxu3 }
 0x2c8   : > { %v1829_v11 = vmul.f32 %v3279_v23, %v1805_v47  ;;  %v1932_v39 = vadd.f32 %v3301_v31, %v1931_v20 }
 0x2ca   : > { %v1841_v58 = vpack.c.bf16 %v1829_v11, %v1828_v52  ;;  %1984 = vst [vmem:[%s3304_s6 + $0x28] sm:$0xff] %v1932_v39 }
 0x2cc   : > { %1973 = vmatmul.bf16.gmra.mxu3 %v1841_v58 }
 0x2cf   : > { %v1934_v49 = vpop.f32.mrf.mxu3 }
 0x2d0   : > { %v1935_v14 = vadd.f32 %v3301_v31, %v1934_v49 }
 0x2d2   : > { %1985 = vst [vmem:[%s3304_s6 + $0x30] sm:$0xff] %v1935_v14 }
 0x2d7   : > { %v1936_v60 = vpop.f32.mrf.mxu3 }
 0x2d8   : > { %v1937_v35 = vadd.f32 %v3301_v31, %v1936_v60 }
 0x2da   : > { %1986 = vst [vmem:[%s3304_s6 + $0x38] sm:$0xff] %v1937_v35 }
 0x2df   : > { %v1939_v26 = vpop.f32.mrf.mxu3 }
 0x2e0   : > { %v1940_v23 = vadd.f32 %v3301_v31, %v1939_v26 }
 0x2e2   : > { %1987 = vst [vmem:[%s3304_s6 + $0x40] sm:$0xff] %v1940_v23 }
 0x2e7   : > { %v1941_v21 = vpop.f32.mrf.mxu3 }
 0x2e8   : > { %v1942_v62 = vadd.f32 %v3301_v31, %v1941_v21 }
 0x2ea   : > { %1988 = vst [vmem:[%s3304_s6 + $0x48] sm:$0xff] %v1942_v62 }
 0x2ef   : > { %v1944_v32 = vpop.f32.mrf.mxu3 }
 0x2f0   : > { %v1945_v38 = vadd.f32 %v3301_v31, %v1944_v32 }
 0x2f2   : > { %1989 = vst [vmem:[%s3304_s6 + $0x50] sm:$0xff] %v1945_v38 }
 0x2f7   : > { %v1946_v55 = vpop.f32.mrf.mxu3 }
 0x2f8   : > { %v1947_v1 = vadd.f32 %v3301_v31, %v1946_v55 }
 0x2fa   : > { %1990 = vst [vmem:[%s3304_s6 + $0x58] sm:$0xff] %v1947_v1 }
 0x2ff   : > { %v1949_v40 = vpop.f32.mrf.mxu3 }
 0x300   : > { %v1950_v9 = vadd.f32 %v3301_v31, %v1949_v40 }
 0x302   : > { %1991 = vst [vmem:[%s3304_s6 + $0x60] sm:$0xff] %v1950_v9 }
 0x307   : > { %v1951_v0 = vpop.f32.mrf.mxu3 }
 0x308   : > { %v1952_v44 = vadd.f32 %v3301_v31, %v1951_v0 }
 0x30a   : > { %1992 = vst [vmem:[%s3304_s6 + $0x68] sm:$0xff] %v1952_v44 }
 0x30f   : > { %v1954_v48 = vpop.f32.mrf.mxu3 }
 0x310   : > { %v1955_v13 = vadd.f32 %v3301_v31, %v1954_v48 }
 0x312   : > { %1993 = vst [vmem:[%s3304_s6 + $0x70] sm:$0xff] %v1955_v13 }
 0x317   : > { %v1956_v17 = vpop.f32.mrf.mxu3 }
 0x318   : > { %v1957_v30 = vadd.f32 %v3301_v31, %v1956_v17 }
 0x31a   : > { %1994 = vst [vmem:[%s3304_s6 + $0x78] sm:$0xff] %v1957_v30 }
 0x31f   : > { %v1959_v29 = vpop.f32.mrf.mxu3 }
 0x320   : > { %v1960_v3 = vadd.f32 %v3301_v31, %v1959_v29 }
 0x322   : > { %1995 = vst [vmem:[%s3304_s6 + $0x80] sm:$0xff] %v1960_v3 }
 0x327   : > { %v1961_v5 = vpop.f32.mrf.mxu3 }
 0x328   : > { %v1962_v4 = vadd.f32 %v3301_v31, %v1961_v5 }
 0x32a   : > { %1996 = vst [vmem:[%s3304_s6 + $0x88] sm:$0xff] %v1962_v4 }
 0x32f   : > { %v1964_v8 = vpop.f32.mrf.mxu3 }
 0x330   : > { %v1965_v28 = vadd.f32 %v3301_v31, %v1964_v8 }
 0x332   : > { %1997 = vst [vmem:[%s3304_s6 + $0x90] sm:$0xff] %v1965_v28 }
 0x337   : > { %v1966_v54 = vpop.f32.mrf.mxu3 }
 0x338   : > { %v1967_v50 = vadd.f32 %v3301_v31, %v1966_v54 }
 0x33a   : > { %1998 = vst [vmem:[%s3304_s6 + $0x98] sm:$0xff] %v1967_v50 }
 0x33f   : > { %v1969_v56 = vpop.f32.mrf.mxu3 }
 0x340   : > { %v1970_v24 = vadd.f32 %v3301_v31, %v1969_v56 }
 0x342   : > { %1999 = vst [vmem:[%s3304_s6 + $0xa0] sm:$0xff] %v1970_v24 }
 0x347   : > { %v1971_v12 = vpop.f32.mrf.mxu3 }
 0x348   : > { %v1972_v22 = vadd.f32 %v3301_v31, %v1971_v12 }
 0x34a   : > { %2000 = vst [vmem:[%s3304_s6 + $0xa8] sm:$0xff] %v1972_v22 }
 0x34f   : > { %v1974_v57 = vpop.f32.mrf.mxu3 }
 0x350   : > { %v1975_v41 = vadd.f32 %v3301_v31, %v1974_v57 }
 0x352   : > { %2001 = vst [vmem:[%s3304_s6 + $0xb0] sm:$0xff] %v1975_v41 }
 0x357   : > { %v1976_v7 = vpop.f32.mrf.mxu3 }
 0x358   : > { %v1977_v61 = vadd.f32 %v3301_v31, %v1976_v7 }
 0x35a   : > { %2002 = vst [vmem:[%s3304_s6 + $0xb8] sm:$0xff] %v1977_v61 }
 0x35b   : > { %2555 = shalt.err (!%p2552_p3)
}
 0x35c   : > { %s2592_s23 = smov 128   ;;  %s2593_s30 = smov 8  }
 0x35d   : > { %2389 = dma.vmem_to_hbm [thread:$0]  (%p2662_p5), %s2017_s12, 3072, %s2019_s14, %s2004_s9, %s2592_s23, %s2592_s23, %s2593_s30  }
 0x35e PF: > { %p2395_p4 = scmp.ge.s32.totalorder %s2590_s21, 2  ;;  %s2033_s6 = sand.u32 1, %s2578_s18  }
 0x35f   : > { %s2034_s7 = scalar_lea.sflag [#allocation3], %s2033_s6 }
 0x360   : > { %p2392_p7 = pnand %p2395_p4, %p2666_p6 }
 0x362   : > { %p2393_p8 = pneg %p2392_p7 }
 0x364   : > { %2573 = dma.done.wait (%p2393_p8), %s2034_s7, 3072  }
 0x365   : > { %2575 = vsyncadd (%p2393_p8), %s2034_s7, 4294964224  ;;  %p15_p9 = scmp.ge.s32.totalorder %s2649_s24, 4   ;;  %s3401_s18 = smov %s2582_s19 }
 0x366   : > { %s3402_s19 = smov %s2586_s20  ;;  %s3403_s20 = smov %s2660_s27 }
 0x367   : > { %s3404_s21 = smov %s2649_s24  ;;  %17 = sbr.rel (!%p15_p9) target bundleno = 3 (0x3), region = 75 }
 0x36c   :  { %2040 = vsyncpa [#allocation3], 1 }
 0x36d   :  { %2042 = vsyncpa [#allocation3 + $0x1], 1 }

</bundles_post_ra>
